<compile_context>
chip_gen: v6e
topology: v6e:2x2x1
jax: 0.10.0
libtpu: 0.0.40
codegen_flags: <defaults>
</compile_context>

<pallas_src>
import functools

import jax
import jax.numpy as jnp
from jax.experimental import pallas as pl
from jax.experimental.pallas import tpu as pltpu

D_IN, HID, D_OUT = 28, 300, 100   # logical (PyTorch) sizes
HID_P = 384                       # hidden width padded to 3*128 lanes


# ----------------------------------------------------------------------------- kernel
def dn_kernel(x_ref, w1_ref, b1_ref, wm_ref, bm_ref, w6_ref, b6_ref, o_ref,
              *, ew_dtype):
    # Layer 1: [bm, 28] @ [28, 384]; bf16 MXU inputs, f32 accumulation.
    x = x_ref[...].astype(jnp.bfloat16)
    a = jnp.dot(x, w1_ref[...], preferred_element_type=jnp.float32)
    h = jnp.maximum(a.astype(ew_dtype) + b1_ref[...].astype(ew_dtype), 0)

    # Four identical hidden layers, statically unrolled: [bm,384] @ [384,384].
    for l in range(4):
        a = jnp.dot(h.astype(jnp.bfloat16), wm_ref[l],
                    preferred_element_type=jnp.float32)
        h = jnp.maximum(a.astype(ew_dtype) + bm_ref[l].astype(ew_dtype), 0)

    # Output layer: [bm,384] @ [384,100] -> written straight to [N,100].
    out = jnp.dot(h.astype(jnp.bfloat16), w6_ref[...],
                  preferred_element_type=jnp.float32) + b6_ref[...]
    o_ref[...] = out.astype(o_ref.dtype)


# ----------------------------------------------------------------------------- param prep
def prepare_params(params_f32):
    """Zero-pad hidden dims 300->384, cast weights to bf16, stack hidden layers.

    params_f32: list of 6 (W [in,out] f32, b [1,out] f32) pairs.
    Returns: (w1 [28,384] bf16, b1 [1,384] f32,
              wm [4,384,384] bf16, bm [4,1,384] f32,
              w6 [384,100] bf16, b6 [1,100] f32)
    Padding is mathematically inert (zero rows/cols/bias -> ReLU(0)=0).
    """
    def pad_wb(w, b, out_p, in_p=None):
        w = jnp.asarray(w, jnp.float32)
        b = jnp.asarray(b, jnp.float32).reshape(1, -1)
        in_p = w.shape[0] if in_p is None else in_p
        w = jnp.pad(w, ((0, in_p - w.shape[0]), (0, out_p - w.shape[1])))
        b = jnp.pad(b, ((0, 0), (0, out_p - b.shape[1])))
        return w.astype(jnp.bfloat16), b

    (w1, b1), (w2, b2), (w3, b3), (w4, b4), (w5, b5), (w6, b6) = params_f32
    w1p, b1p = pad_wb(w1, b1, HID_P)                       # [28,384], [1,384]
    mids = [pad_wb(w, b, HID_P, HID_P)
            for (w, b) in ((w2, b2), (w3, b3), (w4, b4), (w5, b5))]
    wm = jnp.stack([w for w, _ in mids])                   # [4,384,384] bf16
    bm = jnp.stack([b for _, b in mids])                   # [4,1,384]   f32
    w6p, b6p = pad_wb(w6, b6, D_OUT, HID_P)                # [384,100], [1,100]
    return (w1p, b1p, wm, bm, w6p, b6p)


def _default_ew_dtype():
    """bf16 elementwise chain on v6e/v7x (bf16 VPU); f32 on v5e/v5p."""
    try:
        kind = jax.devices()[0].device_kind.lower()
    except Exception:
        kind = ""
    return jnp.float32 if "v5" in kind else jnp.bfloat16


def _pick_block_m(n):
    """Big tiles for big batches; >=2 grid steps when N > 8 (v7x megacore)."""
    if n <= 8:
        return max(n, 1)
    if n >= 2048:
        bm = 1024
    elif n >= 512:
        bm = 256
    else:
        bm = 128
    if pl.cdiv(n, bm) < 2:
        bm = max(8, (((n + 1) // 2) + 7) // 8 * 8)
    return bm


# ----------------------------------------------------------------------------- wrapper
def dn_forward(x, kernel_params, *, block_m=None, ew_dtype=None):
    """x: [N, 28] f32. kernel_params: output of prepare_params. Returns [N, 100]."""
    x = jnp.asarray(x, jnp.float32)
    N, d_in = x.shape
    assert d_in == D_IN

    if block_m is None:
        block_m = _pick_block_m(N)
    if ew_dtype is None:
        ew_dtype = _default_ew_dtype()

    w1, b1, wm, bm, w6, b6 = kernel_params

    def const_spec(arr):
        zeros = (0,) * arr.ndim
        return pl.BlockSpec(arr.shape, lambda i, _z=zeros: _z)

    flops = 2 * N * (D_IN * HID + 4 * HID * HID + HID * D_OUT)
    bytes_accessed = (x.size * 4 + N * D_OUT * 4
                      + sum(int(a.size) * a.dtype.itemsize for a in kernel_params))
    cost = pl.CostEstimate(flops=int(flops), transcendentals=0,
                           bytes_accessed=int(bytes_accessed))

    out = pl.pallas_call(
        functools.partial(dn_kernel, ew_dtype=ew_dtype),
        out_shape=jax.ShapeDtypeStruct((N, D_OUT), jnp.float32),
        grid=(pl.cdiv(N, block_m),),
        in_specs=[
            pl.BlockSpec((block_m, D_IN), lambda i: (i, 0)),
            const_spec(w1), const_spec(b1),
            const_spec(wm), const_spec(bm),
            const_spec(w6), const_spec(b6),
        ],
        out_specs=pl.BlockSpec((block_m, D_OUT), lambda i: (i, 0)),
        compiler_params=pltpu.CompilerParams(
            dimension_semantics=("parallel",),
        ),
        cost_estimate=cost,
    )(x, w1, b1, wm, bm, w6, b6)
    return out


# ----------------------------------------------------------------------------- reference / init
def init_dn_params(key, H=HID, out=D_OUT, in_dim=D_IN):
    """PyTorch-style uniform init matching the DN layer shapes (f32)."""
    dims = [(in_dim, H), (H, H), (H, H), (H, H), (H, H), (H, out)]
    params = []
    for (fan_in, fan_out) in dims:
        key, kw, kb = jax.random.split(key, 3)
        bound = 1.0 / jnp.sqrt(jnp.float32(fan_in))
        w = jax.random.uniform(kw, (fan_in, fan_out), jnp.float32, -bound, bound)
        b = jax.random.uniform(kb, (1, fan_out), jnp.float32, -bound, bound)
        params.append((w, b))
    return params


def dn_reference(x, params):
    h = x
    for i, (w, b) in enumerate(params):
        h = h @ w + b
        if i != len(params) - 1:
            h = jnp.maximum(h, 0.0)
    return h


# ----------------------------------------------------------------------------- demo
if __name__ == "__main__":
    key = jax.random.PRNGKey(0)
    key, kx1, kx2 = jax.random.split(key, 3)

    params_f32 = init_dn_params(key)
    kparams = prepare_params(params_f32)

    # Small single-tile batch.
    x1 = jax.random.normal(kx1, (8, D_IN), jnp.float32)
    y1 = jax.block_until_ready(dn_forward(x1, kparams))
    assert y1.shape == (8, D_OUT)
    r1 = dn_reference(x1, params_f32)
    err1 = float(jnp.max(jnp.abs(y1 - r1)))
    # bf16 weights (+ bf16 elementwise on v6e/v7x) -> loose tolerance vs f32 ref.
    assert err1 < 5e-2, err1

    # Ragged multi-tile batch (N=20 -> 2 grid steps, masked last tile).
    x2 = jax.random.normal(kx2, (20, D_IN), jnp.float32)
    y2 = jax.block_until_ready(dn_forward(x2, kparams))
    assert y2.shape == (20, D_OUT)
    r2 = dn_reference(x2, params_f32)
    err2 = float(jnp.max(jnp.abs(y2 - r2)))
    assert err2 < 5e-2, err2

    print("KERNEL_OK")
</pallas_src>

<mosaic_0001>
module attributes {stable_mosaic.version = 11 : i64} {
  func.func @dn_kernel(%arg0: i32, %arg1: memref<8x28xf32, #tpu.memory_space<vmem>>, %arg2: memref<28x384xbf16, #tpu.memory_space<vmem>>, %arg3: memref<1x384xf32, #tpu.memory_space<vmem>>, %arg4: memref<4x384x384xbf16, #tpu.memory_space<vmem>>, %arg5: memref<4x1x384xf32, #tpu.memory_space<vmem>>, %arg6: memref<384x100xbf16, #tpu.memory_space<vmem>>, %arg7: memref<1x100xf32, #tpu.memory_space<vmem>>, %arg8: memref<8x100xf32, #tpu.memory_space<vmem>>) attributes {dimension_semantics = [#tpu.dimension_semantics<parallel>], iteration_bounds = array<i64: 1>, scalar_prefetch = 0 : i64, scratch_operands = 0 : i64, tpu.core_type = #tpu.core_type<tc>, window_params = [{transform_indices = @transform_0, window_bounds = array<i64: 8, 28>}, {pipeline_mode = #tpu.pipeline_mode<synchronous>, transform_indices = @transform_1, window_bounds = array<i64: 28, 384>}, {pipeline_mode = #tpu.pipeline_mode<synchronous>, transform_indices = @transform_2, window_bounds = array<i64: 1, 384>}, {pipeline_mode = #tpu.pipeline_mode<synchronous>, transform_indices = @transform_3, window_bounds = array<i64: 4, 384, 384>}, {pipeline_mode = #tpu.pipeline_mode<synchronous>, transform_indices = @transform_4, window_bounds = array<i64: 4, 1, 384>}, {pipeline_mode = #tpu.pipeline_mode<synchronous>, transform_indices = @transform_5, window_bounds = array<i64: 384, 100>}, {pipeline_mode = #tpu.pipeline_mode<synchronous>, transform_indices = @transform_6, window_bounds = array<i64: 1, 100>}, {transform_indices = @transform_7, window_bounds = array<i64: 8, 100>}]} {
    %c0 = arith.constant 0 : index
    %c0_0 = arith.constant 0 : index
    %0 = vector.load %arg1[%c0, %c0_0] : memref<8x28xf32, #tpu.memory_space<vmem>>, vector<8x28xf32>
    %1 = arith.truncf %0 : vector<8x28xf32> to vector<8x28xbf16>
    %c0_1 = arith.constant 0 : index
    %c0_2 = arith.constant 0 : index
    %2 = vector.load %arg2[%c0_1, %c0_2] : memref<28x384xbf16, #tpu.memory_space<vmem>>, vector<28x384xbf16>
    %cst = arith.constant dense<0.000000e+00> : vector<8x384xf32>
    %3 = tpu.matmul %1, %2, %cst {dimension_numbers = #tpu.dot_dimension_numbers<[1], [0], [0], [1], [0, 0, 1, 1], [], []>} : vector<8x28xbf16>, vector<28x384xbf16>, vector<8x384xf32> -> vector<8x384xf32>
    %4 = arith.truncf %3 : vector<8x384xf32> to vector<8x384xbf16>
    %c0_3 = arith.constant 0 : index
    %c0_4 = arith.constant 0 : index
    %5 = vector.load %arg3[%c0_3, %c0_4] : memref<1x384xf32, #tpu.memory_space<vmem>>, vector<1x384xf32>
    %6 = arith.truncf %5 : vector<1x384xf32> to vector<1x384xbf16>
    %7 = vector.broadcast %6 : vector<1x384xbf16> to vector<8x384xbf16>
    %8 = arith.addf %4, %7 : vector<8x384xbf16>
    %cst_5 = arith.constant 0.000000e+00 : bf16
    %9 = vector.broadcast %cst_5 : bf16 to vector<8x384xbf16>
    %10 = arith.maximumf %8, %9 : vector<8x384xbf16>
    %c0_6 = arith.constant 0 : index
    %c0_7 = arith.constant 0 : index
    %c0_8 = arith.constant 0 : index
    %11 = vector.load %arg4[%c0_6, %c0_7, %c0_8] : memref<4x384x384xbf16, #tpu.memory_space<vmem>>, vector<1x384x384xbf16>
    %12 = vector.shape_cast %11 : vector<1x384x384xbf16> to vector<384x384xbf16>
    %cst_9 = arith.constant dense<0.000000e+00> : vector<8x384xf32>
    %13 = tpu.matmul %10, %12, %cst_9 {dimension_numbers = #tpu.dot_dimension_numbers<[1], [0], [0], [1], [0, 0, 1, 1], [], []>} : vector<8x384xbf16>, vector<384x384xbf16>, vector<8x384xf32> -> vector<8x384xf32>
    %14 = arith.truncf %13 : vector<8x384xf32> to vector<8x384xbf16>
    %c0_10 = arith.constant 0 : index
    %c0_11 = arith.constant 0 : index
    %c0_12 = arith.constant 0 : index
    %15 = vector.load %arg5[%c0_10, %c0_11, %c0_12] : memref<4x1x384xf32, #tpu.memory_space<vmem>>, vector<1x1x384xf32>
    %16 = vector.shape_cast %15 : vector<1x1x384xf32> to vector<1x384xf32>
    %17 = arith.truncf %16 : vector<1x384xf32> to vector<1x384xbf16>
    %18 = vector.broadcast %17 : vector<1x384xbf16> to vector<8x384xbf16>
    %19 = arith.addf %14, %18 : vector<8x384xbf16>
    %cst_13 = arith.constant 0.000000e+00 : bf16
    %20 = vector.broadcast %cst_13 : bf16 to vector<8x384xbf16>
    %21 = arith.maximumf %19, %20 : vector<8x384xbf16>
    %c1 = arith.constant 1 : index
    %c0_14 = arith.constant 0 : index
    %c0_15 = arith.constant 0 : index
    %22 = vector.load %arg4[%c1, %c0_14, %c0_15] : memref<4x384x384xbf16, #tpu.memory_space<vmem>>, vector<1x384x384xbf16>
    %23 = vector.shape_cast %22 : vector<1x384x384xbf16> to vector<384x384xbf16>
    %cst_16 = arith.constant dense<0.000000e+00> : vector<8x384xf32>
    %24 = tpu.matmul %21, %23, %cst_16 {dimension_numbers = #tpu.dot_dimension_numbers<[1], [0], [0], [1], [0, 0, 1, 1], [], []>} : vector<8x384xbf16>, vector<384x384xbf16>, vector<8x384xf32> -> vector<8x384xf32>
    %25 = arith.truncf %24 : vector<8x384xf32> to vector<8x384xbf16>
    %c1_17 = arith.constant 1 : index
    %c0_18 = arith.constant 0 : index
    %c0_19 = arith.constant 0 : index
    %26 = vector.load %arg5[%c1_17, %c0_18, %c0_19] : memref<4x1x384xf32, #tpu.memory_space<vmem>>, vector<1x1x384xf32>
    %27 = vector.shape_cast %26 : vector<1x1x384xf32> to vector<1x384xf32>
    %28 = arith.truncf %27 : vector<1x384xf32> to vector<1x384xbf16>
    %29 = vector.broadcast %28 : vector<1x384xbf16> to vector<8x384xbf16>
    %30 = arith.addf %25, %29 : vector<8x384xbf16>
    %cst_20 = arith.constant 0.000000e+00 : bf16
    %31 = vector.broadcast %cst_20 : bf16 to vector<8x384xbf16>
    %32 = arith.maximumf %30, %31 : vector<8x384xbf16>
    %c2 = arith.constant 2 : index
    %c0_21 = arith.constant 0 : index
    %c0_22 = arith.constant 0 : index
    %33 = vector.load %arg4[%c2, %c0_21, %c0_22] : memref<4x384x384xbf16, #tpu.memory_space<vmem>>, vector<1x384x384xbf16>
    %34 = vector.shape_cast %33 : vector<1x384x384xbf16> to vector<384x384xbf16>
    %cst_23 = arith.constant dense<0.000000e+00> : vector<8x384xf32>
    %35 = tpu.matmul %32, %34, %cst_23 {dimension_numbers = #tpu.dot_dimension_numbers<[1], [0], [0], [1], [0, 0, 1, 1], [], []>} : vector<8x384xbf16>, vector<384x384xbf16>, vector<8x384xf32> -> vector<8x384xf32>
    %36 = arith.truncf %35 : vector<8x384xf32> to vector<8x384xbf16>
    %c2_24 = arith.constant 2 : index
    %c0_25 = arith.constant 0 : index
    %c0_26 = arith.constant 0 : index
    %37 = vector.load %arg5[%c2_24, %c0_25, %c0_26] : memref<4x1x384xf32, #tpu.memory_space<vmem>>, vector<1x1x384xf32>
    %38 = vector.shape_cast %37 : vector<1x1x384xf32> to vector<1x384xf32>
    %39 = arith.truncf %38 : vector<1x384xf32> to vector<1x384xbf16>
    %40 = vector.broadcast %39 : vector<1x384xbf16> to vector<8x384xbf16>
    %41 = arith.addf %36, %40 : vector<8x384xbf16>
    %cst_27 = arith.constant 0.000000e+00 : bf16
    %42 = vector.broadcast %cst_27 : bf16 to vector<8x384xbf16>
    %43 = arith.maximumf %41, %42 : vector<8x384xbf16>
    %c3 = arith.constant 3 : index
    %c0_28 = arith.constant 0 : index
    %c0_29 = arith.constant 0 : index
    %44 = vector.load %arg4[%c3, %c0_28, %c0_29] : memref<4x384x384xbf16, #tpu.memory_space<vmem>>, vector<1x384x384xbf16>
    %45 = vector.shape_cast %44 : vector<1x384x384xbf16> to vector<384x384xbf16>
    %cst_30 = arith.constant dense<0.000000e+00> : vector<8x384xf32>
    %46 = tpu.matmul %43, %45, %cst_30 {dimension_numbers = #tpu.dot_dimension_numbers<[1], [0], [0], [1], [0, 0, 1, 1], [], []>} : vector<8x384xbf16>, vector<384x384xbf16>, vector<8x384xf32> -> vector<8x384xf32>
    %47 = arith.truncf %46 : vector<8x384xf32> to vector<8x384xbf16>
    %c3_31 = arith.constant 3 : index
    %c0_32 = arith.constant 0 : index
    %c0_33 = arith.constant 0 : index
    %48 = vector.load %arg5[%c3_31, %c0_32, %c0_33] : memref<4x1x384xf32, #tpu.memory_space<vmem>>, vector<1x1x384xf32>
    %49 = vector.shape_cast %48 : vector<1x1x384xf32> to vector<1x384xf32>
    %50 = arith.truncf %49 : vector<1x384xf32> to vector<1x384xbf16>
    %51 = vector.broadcast %50 : vector<1x384xbf16> to vector<8x384xbf16>
    %52 = arith.addf %47, %51 : vector<8x384xbf16>
    %cst_34 = arith.constant 0.000000e+00 : bf16
    %53 = vector.broadcast %cst_34 : bf16 to vector<8x384xbf16>
    %54 = arith.maximumf %52, %53 : vector<8x384xbf16>
    %c0_35 = arith.constant 0 : index
    %c0_36 = arith.constant 0 : index
    %55 = vector.load %arg6[%c0_35, %c0_36] : memref<384x100xbf16, #tpu.memory_space<vmem>>, vector<384x100xbf16>
    %cst_37 = arith.constant dense<0.000000e+00> : vector<8x100xf32>
    %56 = tpu.matmul %54, %55, %cst_37 {dimension_numbers = #tpu.dot_dimension_numbers<[1], [0], [0], [1], [0, 0, 1, 1], [], []>} : vector<8x384xbf16>, vector<384x100xbf16>, vector<8x100xf32> -> vector<8x100xf32>
    %c0_38 = arith.constant 0 : index
    %c0_39 = arith.constant 0 : index
    %57 = vector.load %arg7[%c0_38, %c0_39] : memref<1x100xf32, #tpu.memory_space<vmem>>, vector<1x100xf32>
    %58 = vector.broadcast %57 : vector<1x100xf32> to vector<8x100xf32>
    %59 = arith.addf %56, %58 : vector<8x100xf32>
    %c0_40 = arith.constant 0 : index
    %c0_41 = arith.constant 0 : index
    %60 = vector.load %arg8[%c0_40, %c0_41] : memref<8x100xf32, #tpu.memory_space<vmem>>, vector<8x100xf32>
    tpu.vector_store %arg8[%c0_40, %c0_41], %59 {strides = array<i32>} : memref<8x100xf32, #tpu.memory_space<vmem>>, vector<8x100xf32>,
    return
  }
  func.func @transform_0(%arg0: i32) -> (i32, i32) {
    %c0_i32 = arith.constant 0 : i32
    %c0_i32_0 = arith.constant 0 : i32
    return %arg0, %c0_i32 : i32, i32
  }
  func.func @transform_1(%arg0: i32) -> (i32, i32) {
    %c0_i32 = arith.constant 0 : i32
    %c0_i32_0 = arith.constant 0 : i32
    %c0_i32_1 = arith.constant 0 : i32
    return %c0_i32, %c0_i32_0 : i32, i32
  }
  func.func @transform_2(%arg0: i32) -> (i32, i32) {
    %c0_i32 = arith.constant 0 : i32
    %c0_i32_0 = arith.constant 0 : i32
    %c0_i32_1 = arith.constant 0 : i32
    return %c0_i32, %c0_i32_0 : i32, i32
  }
  func.func @transform_3(%arg0: i32) -> (i32, i32, i32) {
    %c0_i32 = arith.constant 0 : i32
    %c0_i32_0 = arith.constant 0 : i32
    %c0_i32_1 = arith.constant 0 : i32
    %c0_i32_2 = arith.constant 0 : i32
    return %c0_i32, %c0_i32_0, %c0_i32_1 : i32, i32, i32
  }
  func.func @transform_4(%arg0: i32) -> (i32, i32, i32) {
    %c0_i32 = arith.constant 0 : i32
    %c0_i32_0 = arith.constant 0 : i32
    %c0_i32_1 = arith.constant 0 : i32
    %c0_i32_2 = arith.constant 0 : i32
    return %c0_i32, %c0_i32_0, %c0_i32_1 : i32, i32, i32
  }
  func.func @transform_5(%arg0: i32) -> (i32, i32) {
    %c0_i32 = arith.constant 0 : i32
    %c0_i32_0 = arith.constant 0 : i32
    %c0_i32_1 = arith.constant 0 : i32
    return %c0_i32, %c0_i32_0 : i32, i32
  }
  func.func @transform_6(%arg0: i32) -> (i32, i32) {
    %c0_i32 = arith.constant 0 : i32
    %c0_i32_0 = arith.constant 0 : i32
    %c0_i32_1 = arith.constant 0 : i32
    return %c0_i32, %c0_i32_0 : i32, i32
  }
  func.func @transform_7(%arg0: i32) -> (i32, i32) {
    %c0_i32 = arith.constant 0 : i32
    %c0_i32_0 = arith.constant 0 : i32
    return %arg0, %c0_i32 : i32, i32
  }
}

</mosaic_0001>

<bundles_post_ra>
// kernel: tpu_custom_call.1
= control target key start
LH: loop header
LB: loop body
LE: loop exit
PB: predicated region body
PF: predicated region fallthrough
CT: control target
= control target key end

     0   :  { %12 = vsyncpa [#allocation3], 0  ;;  %s4802_s0 = inlined_call_operand.hbm [shape: f32[8,28], index: 0, kind: input, shape index: {}]   ;;  %s4803_s1 = inlined_call_operand.hbm [shape: bf16[28,384], index: 1, kind: input, shape index: {}]   ;;  %s4804_s2 = inlined_call_operand.hbm [shape: f32[1,384], index: 2, kind: input, shape index: {}]   ;;  %s4805_s3 = inlined_call_operand.hbm [shape: bf16[4,384,384], index: 3, kind: input, shape index: {}]   ;;  %s4806_s4 = inlined_call_operand.hbm [shape: f32[4,1,384], index: 4, kind: input, shape index: {}]   ;;  %s4807_s5 = inlined_call_operand.vmem [shape: bf16[384,100], index: 5, kind: input, shape index: {}]   ;;  %s4808_s6 = inlined_call_operand.hbm [shape: f32[1,100], index: 6, kind: input, shape index: {}]   ;;  %s4809_s7 = inlined_call_operand.hbm [shape: f32[8,100], index: 7, kind: output, shape index: {}]  }
   0x1   :  { %13 = vsyncpa [#allocation6], 0 }
   0x2   :  { %14 = vsyncpa [#allocation9], 0 }
   0x3   :  { %15 = vsyncpa [#allocation12], 0 }
   0x4   :  { %16 = vsyncpa [#allocation4], 0  ;;  %s4529_s24 = smov [#allocation5]  }
   0x5   :  { %s32_s25 = sshll.u32 %s4529_s24, 4  ;;  %s33_s25 = int_to_ptr.vmem [resolvable:$true] %s32_s25 }
   0x6   :  { %s4387_s26 = scalar_lea.vmem %s33_s25, 768  ;;  %p4392_p1 = scmp.lt.s32.totalorder %s33_s25, %s33_s25 }
   0x7   :  { %p4388_p0 = scmp.ne.s32.totalorder %s33_s25, %s4387_s26  ;;  %p4393_p2 = scmp.lt.s32.totalorder %s4387_s26, %s4387_s26 }
   0x9   :  { %p4394_p3 = por %p4393_p2, %p4392_p1 }
   0xb   :  { %p4395_p4 = pnand %p4394_p3, %p4388_p0 }
   0xd   :  { %4398 = shalt.err (!%p4395_p4)
}
   0xe   :  { %s4530_s27 = smov 192   ;;  %s4531_s28 = smov 12  }
   0xf   :  { %38 = dma.hbm_to_vmem [thread:$0]  %s4803_s1, 768, %s33_s25, [#allocation6], %s4530_s27, %s4530_s27, %s4531_s28  }
  0x10   :  { %s4532_s8 = smov [#allocation8]   ;;  %s4533_s10 = smov [#allocation2]  }
  0x11   :  { %s54_s9 = sshll.u32 %s4532_s8, 4  ;;  %s23_s11 = sshll.u32 %s4533_s10, 4  ;;  %s55_s9 = int_to_ptr.vmem [resolvable:$true] %s54_s9  ;;  %s24_s11 = int_to_ptr.vmem [resolvable:$true] %s23_s11 }
  0x12   :  { %s4407_s12 = scalar_lea.vmem %s55_s9, 36864  ;;  %p4412_p6 = scmp.lt.s32.totalorder %s55_s9, %s55_s9 }
  0x13   :  { %p4408_p5 = scmp.ne.s32.totalorder %s55_s9, %s4407_s12  ;;  %p4413_p7 = scmp.lt.s32.totalorder %s4407_s12, %s4407_s12 }
  0x15   :  { %p4414_p8 = por %p4413_p7, %p4412_p6 }
  0x17   :  { %p4415_p9 = pnand %p4414_p8, %p4408_p5 }
  0x19   :  { %4418 = shalt.err (!%p4415_p9)
}
  0x1a   :  { %60 = dma.hbm_to_vmem [thread:$0]  %s4805_s3, 36864, %s55_s9, [#allocation9], %s4530_s27, %s4530_s27, %s4531_s28  }
  0x1b   :  { %s4427_s15 = scalar_lea.vmem %s24_s11, 128  ;;  %p4432_p11 = scmp.lt.s32.totalorder %s24_s11, %s24_s11 }
  0x1c   :  { %p4428_p10 = scmp.ne.s32.totalorder %s24_s11, %s4427_s15  ;;  %p4433_p12 = scmp.lt.s32.totalorder %s4427_s15, %s4427_s15 }
  0x1e   :  { %p4434_p13 = por %p4433_p12, %p4432_p11 }
  0x20   :  { %p4435_p0 = pnand %p4434_p13, %p4428_p10 }
  0x22   :  { %4438 = shalt.err (!%p4435_p0)
}
  0x23   :  { %26 = dma.hbm_to_vmem [thread:$0]  %s4802_s0, 128, %s24_s11, [#allocation3]  }
  0x24   :  { %s4534_s17 = smov [#allocation7]   ;;  %s4535_s19 = smov [#allocation10]  }
  0x25   :  { %s45_s18 = sshll.u32 %s4534_s17, 4  ;;  %s66_s20 = sshll.u32 %s4535_s19, 4  ;;  %s46_s18 = int_to_ptr.vmem [resolvable:$true] %s45_s18  ;;  %s67_s20 = int_to_ptr.vmem [resolvable:$true] %s66_s20 }
  0x26   :  { %s4447_s21 = scalar_lea.vmem %s46_s18, 48  ;;  %s4451_s3 = scalar_lea.vmem %s46_s18, 64 }
  0x27   :  { %p4448_p1 = scmp.ne.s32.totalorder %s46_s18, %s4447_s21  ;;  %p4452_p2 = scmp.lt.s32.totalorder %s46_s18, %s46_s18 }
  0x28   :  { %p4453_p3 = scmp.lt.s32.totalorder %s4451_s3, %s4447_s21 }
  0x2a   :  { %p4454_p4 = por %p4453_p3, %p4452_p2 }
  0x2c   :  { %p4455_p5 = pnand %p4454_p4, %p4448_p1 }
  0x2e   :  { %4458 = shalt.err (!%p4455_p5)
}
  0x2f   :  { %48 = dma.hbm_to_vmem [thread:$0]  %s4804_s2, 48, %s46_s18, [#allocation6]  }
  0x30   :  { %s4467_s24 = scalar_lea.vmem %s67_s20, 192  ;;  %p4472_p7 = scmp.lt.s32.totalorder %s67_s20, %s67_s20 }
  0x31   :  { %p4468_p6 = scmp.ne.s32.totalorder %s67_s20, %s4467_s24  ;;  %p4473_p8 = scmp.lt.s32.totalorder %s4467_s24, %s4467_s24 }
  0x33   :  { %p4474_p9 = por %p4473_p8, %p4472_p7 }
  0x35   :  { %p4475_p10 = pnand %p4474_p9, %p4468_p6 }
  0x37   :  { %4478 = shalt.err (!%p4475_p10)
}
  0x38   :  { %s4536_s0 = smov 48   ;;  %s4537_s25 = smov 3  }
  0x39   :  { %72 = dma.hbm_to_vmem [thread:$0]  %s4806_s4, 192, %s67_s20, [#allocation9], %s4536_s0, %s4536_s0, %s4537_s25  }
  0x3a   :  { %s4538_s28 = smov [#allocation11]  }
  0x3b   :  { %s81_s29 = sshll.u32 %s4538_s28, 4  ;;  %s82_s29 = int_to_ptr.vmem [resolvable:$true] %s81_s29 }
  0x3c   :  { %s4487_s30 = scalar_lea.vmem %s82_s29, 16  ;;  %s4491_s2 = scalar_lea.vmem %s82_s29, 32 }
  0x3d   :  { %p4488_p11 = scmp.ne.s32.totalorder %s82_s29, %s4487_s30  ;;  %p4492_p12 = scmp.lt.s32.totalorder %s82_s29, %s82_s29 }
  0x3e   :  { %p4493_p13 = scmp.lt.s32.totalorder %s4491_s2, %s4487_s30 }
  0x40   :  { %p4494_p0 = por %p4493_p13, %p4492_p12 }
  0x42   :  { %p4495_p1 = pnand %p4494_p0, %p4488_p11 }
  0x44   :  { %4498 = shalt.err (!%p4495_p1)
}
  0x45   :  { %84 = dma.hbm_to_vmem [thread:$0]  %s4808_s6, 16, %s82_s29, [#allocation12]  }
  0x46   :  { %4519 = dma.done.wait [#allocation3], 128  }
  0x47   :  { %4520 = vsyncadd [#allocation3], 4294967168 }
  0x48   :  { %4521 = dma.done.wait [#allocation6], 816  }
  0x49   :  { %4522 = vsyncadd [#allocation6], 4294966480 }
  0x4a   :  { %4523 = dma.done.wait [#allocation9], 37056  }
  0x4b   :  { %4524 = vsyncadd [#allocation9], 4294930240 }
  0x4c   :  { %4525 = dma.done.wait [#allocation12], 16  }
  0x4d   :  { %4526 = vsyncadd [#allocation12], 4294967280  ;;  %v4539_v0 = vmov 0.0   ;;  %v4540_v1 = vmov 0   ;;  %vm4541_vm0 = vmmov 0   ;;  %vm147_vm1 = vcmask 1045504  }
  0x4e   :  { %3841 = vmatprep.subr.bf16.mxu1 %v4539_v0  ;;  %189 = vmatprep.mubr.bf16.mxu0 %v4540_v1  ;;  %v3963_v2 = vld [vmem:[#allocation5 + $0x1c] ss:$12 sps:$4 sm:$0x3f]   ;;  %v3965_v3 = vld [vmem:[#allocation5 + $0x18] ss:$12 sps:$4 sm:$0x3f]   ;;  %v243_v61 = vlaneseq }
  0x4f   :  { %3845 = vmatprep.mubr.msk.bf16.mxu1 %vm4541_vm0, %v4539_v0  ;;  %3367 = vmatprep.subr.msk.bf16.mxu0 %vm147_vm1, %v3963_v2  ;;  %v3966_v4 = vld [vmem:[#allocation5 + $0x20] ss:$12 sps:$4 sm:$0x3f]   ;;  %v149_v5 = vsel %vm147_vm1, %v3965_v3, 0  ;;  %v3967_v6 = vld [vmem:[#allocation5 + $0x4] ss:$12 sps:$4 sm:$0xff]  }
  0x50   :  { %v3969_v7 = vld [vmem:[#allocation5] ss:$12 sps:$4 sm:$0xff]   ;;  %v104_v8 = vld [vmem:[#allocation2] sm:$0xff]  ;;  %170 = vmatpush1.bf16.msra.mxu0 %v149_v5  ;;  %v155_v9 = vsel %vm147_vm1, %v3966_v4, 0  ;;  %v3970_v10 = vld [vmem:[#allocation5 + $0x8] ss:$12 sps:$4 sm:$0xff]  }
  0x51   :  { %3842 = vmatpush3.bf16.msra.mxu1 %v155_v9  ;;  %171 = vmatprep.subr.bf16.mxu0 %v3967_v6  ;;  %v3973_v11 = vld [vmem:[#allocation8 + $0xac] ss:$12 sps:$4 sm:$0xff]   ;;  %v105_v12 = vpack.c.bf16 %v104_v8, %v104_v8  ;;  %vm143_vm2 = vcmask 228352   ;;  %v3971_v13 = vld [vmem:[#allocation8 + $0xa8] ss:$12 sps:$4 sm:$0xff]   ;;  %v244_v62 = vshrl.u32 %v243_v61, 7 }
  0x52   :  { %3843 = vmatprep.subr.bf16.mxu1 %v4539_v0  ;;  %v3976_v14 = vld [vmem:[#allocation8 + $0x94] ss:$12 sps:$4 sm:$0xff]   ;;  %v3974_v15 = vld [vmem:[#allocation8 + $0x90] ss:$12 sps:$4 sm:$0xff]   ;;  %v3977_v17 = vld [vmem:[#allocation8 + $0x78] ss:$12 sps:$4 sm:$0xff]  }
  0x53   :  { %v3979_v16 = vld [vmem:[#allocation8 + $0x7c] ss:$12 sps:$4 sm:$0xff]   ;;  %v3997_v19 = vld [vmem:[#allocation8 + $0x22c] ss:$12 sps:$4 sm:$0xff]   ;;  %v3982_v20 = vld [vmem:[#allocation8 + $0x64] ss:$12 sps:$4 sm:$0xff]  }
  0x54   :  { %172 = vmatpush1.bf16.msra.mxu0 %v3969_v7  ;;  %v3995_v18 = vld [vmem:[#allocation8 + $0x228] ss:$12 sps:$4 sm:$0xff]   ;;  %v4001_v21 = vld [vmem:[#allocation8 + $0x210] ss:$12 sps:$4 sm:$0xff]   ;;  %v3980_v23 = vld [vmem:[#allocation8 + $0x60] ss:$12 sps:$4 sm:$0xff]  }
  0x55   :  { %3844 = vmatpush3.bf16.msra.mxu1 %v3970_v10  ;;  %768 = vmatprep.subr.bf16.mxu0 %v3973_v11  ;;  %v4003_v22 = vld [vmem:[#allocation8 + $0x214] ss:$12 sps:$4 sm:$0xff]   ;;  %v3985_v24 = vld [vmem:[#allocation8 + $0x4c] ss:$12 sps:$4 sm:$0xff]   ;;  %v4009_v25 = vld [vmem:[#allocation8 + $0x1fc] ss:$12 sps:$4 sm:$0xff]  }
  0x56   :  { %809 = vmatprep.subr.bf16.mxu1 %v3997_v19  ;;  %v4007_v26 = vld [vmem:[#allocation8 + $0x1f8] ss:$12 sps:$4 sm:$0xff]   ;;  %v3983_v27 = vld [vmem:[#allocation8 + $0x48] ss:$12 sps:$4 sm:$0xff]   ;;  %v4013_v30 = vld [vmem:[#allocation8 + $0x1e0] ss:$12 sps:$4 sm:$0xff]  }
  0x57   :  { %3368 = vmatmul.mubr.msk.bf16.vlgmr.msra.gmra.mxu0 %vm143_vm2, %v105_v12  ;;  %v4015_v28 = vld [vmem:[#allocation8 + $0x1e4] ss:$12 sps:$4 sm:$0xff]   ;;  %v3988_v29 = vld [vmem:[#allocation8 + $0x34] ss:$12 sps:$4 sm:$0xff]   ;;  %v4021_v32 = vld [vmem:[#allocation8 + $0x1cc] ss:$12 sps:$4 sm:$0xff]  }
  0x58   :  { %3846 = vmatmul.mubr.msk.bf16.vlgmr.msra.gmra.mxu1 %vm143_vm2, %v105_v12  ;;  %769 = vmatpush1.bf16.msra.mxu0 %v3971_v13  ;;  %v3986_v31 = vld [vmem:[#allocation8 + $0x30] ss:$12 sps:$4 sm:$0xff]   ;;  %v3989_v34 = vld [vmem:[#allocation8 + $0x18] ss:$12 sps:$4 sm:$0xff]   ;;  %v4019_v35 = vld [vmem:[#allocation8 + $0x1c8] ss:$12 sps:$4 sm:$0xff]  }
  0x59   :  { %770 = vmatprep.subr.bf16.mxu0 %v3976_v14  ;;  %841 = vmatprep.mubr.bf16.mxu1 %v4540_v1  ;;  %v3991_v33 = vld [vmem:[#allocation8 + $0x1c] ss:$12 sps:$4 sm:$0xff]   ;;  %v3994_v36 = vld [vmem:[#allocation8 + $0x4] ss:$12 sps:$4 sm:$0xff]   ;;  %v4027_v37 = vld [vmem:[#allocation8 + $0x1b4] ss:$12 sps:$4 sm:$0xff]  }
  0x5a   :  { %810 = vmatpush1.bf16.msra.mxu1 %v3995_v18  ;;  %v4025_v38 = vld [vmem:[#allocation8 + $0x1b0] ss:$12 sps:$4 sm:$0xff]   ;;  %v3992_v39 = vld [vmem:[#allocation8] ss:$12 sps:$4 sm:$0xff]   ;;  %v4031_v42 = vld [vmem:[#allocation8 + $0x198] ss:$12 sps:$4 sm:$0xff]  }
  0x5b   :  { %811 = vmatprep.subr.bf16.mxu1 %v4003_v22  ;;  %v4033_v40 = vld [vmem:[#allocation8 + $0x19c] ss:$12 sps:$4 sm:$0xff]   ;;  %v4000_v41 = vld [vmem:[#allocation8 + $0x16c] ss:$12 sps:$4 sm:$0xff]   ;;  %v4006_v44 = vld [vmem:[#allocation8 + $0x154] ss:$12 sps:$4 sm:$0xff]  }
  0x5c   :  { %771 = vmatpush1.bf16.msra.mxu0 %v3974_v15  ;;  %v3998_v43 = vld [vmem:[#allocation8 + $0x168] ss:$12 sps:$4 sm:$0xff]   ;;  %v4004_v45 = vld [vmem:[#allocation8 + $0x150] ss:$12 sps:$4 sm:$0xff]   ;;  %v4010_v47 = vld [vmem:[#allocation8 + $0x138] ss:$12 sps:$4 sm:$0xff]  }
  0x5d   :  { %772 = vmatprep.subr.bf16.mxu0 %v3979_v16  ;;  %v4012_v46 = vld [vmem:[#allocation8 + $0x13c] ss:$12 sps:$4 sm:$0xff]   ;;  %v4018_v48 = vld [vmem:[#allocation8 + $0x124] ss:$12 sps:$4 sm:$0xff]   ;;  %v4016_v49 = vld [vmem:[#allocation8 + $0x120] ss:$12 sps:$4 sm:$0xff]  }
  0x5e   :  { %812 = vmatpush1.bf16.msra.mxu1 %v4001_v21  ;;  %v4024_v50 = vld [vmem:[#allocation8 + $0x10c] ss:$12 sps:$4 sm:$0xff]   ;;  %v4022_v51 = vld [vmem:[#allocation8 + $0x108] ss:$12 sps:$4 sm:$0xff]   ;;  %v4028_v53 = vld [vmem:[#allocation8 + $0xf0] ss:$12 sps:$4 sm:$0xff]  }
  0x5f   :  { %813 = vmatprep.subr.bf16.mxu1 %v4009_v25  ;;  %v4030_v52 = vld [vmem:[#allocation8 + $0xf4] ss:$12 sps:$4 sm:$0xff]   ;;  %v4036_v54 = vld [vmem:[#allocation8 + $0xdc] ss:$12 sps:$4 sm:$0xff]   ;;  %v4034_v55 = vld [vmem:[#allocation8 + $0xd8] ss:$12 sps:$4 sm:$0xff]  }
  0x60   :  { %773 = vmatpush1.bf16.msra.mxu0 %v3977_v17  ;;  %v4039_v56 = vld [vmem:[#allocation8 + $0x184] ss:$12 sps:$4 sm:$0xff]   ;;  %v4037_v57 = vld [vmem:[#allocation8 + $0x180] ss:$12 sps:$4 sm:$0xff]   ;;  %v4608_v63 = vsub.s32 0, %v244_v62  ;;  %v4610_v2 = vsub.s32 2, %v244_v62 }
  0x61   :  { %774 = vmatprep.subr.bf16.mxu0 %v3982_v20  ;;  %v4042_v58 = vld [vmem:[#allocation8 + $0xc4] ss:$12 sps:$4 sm:$0xff]   ;;  %v4040_v59 = vld [vmem:[#allocation8 + $0xc0] ss:$12 sps:$4 sm:$0xff]   ;;  %v241_v3 = vld [vmem:[#allocation7] sm:$0x7] }
  0x62   :  { %814 = vmatpush1.bf16.msra.mxu1 %v4007_v26  ;;  %v4043_v60 = vld [vmem:[#allocation8 + $0x170] ss:$12 sps:$4 sm:$0xff]   ;;  %v4612_v4 = vsub.s32 1, %v244_v62  ;;  %v246_v5 = vrot.slane %v241_v3, %v4608_v63  ;;  %v254_v6 = vrot.slane %v241_v3, %v4610_v2  ;;  %v4073_v62 = vld [vmem:[#allocation8 + $0x2b8] ss:$12 sps:$4 sm:$0xff]   ;;  %vm3341_vm3 = vcmask 818176  }
  0x63   :  { %815 = vmatprep.subr.bf16.mxu1 %v4015_v28  ;;  %v4075_v61 = vld [vmem:[#allocation8 + $0x2bc] ss:$12 sps:$4 sm:$0xff]  }
  0x64   :  { %775 = vmatpush1.bf16.msra.mxu0 %v3980_v23  ;;  %v250_v7 = vrot.slane %v241_v3, %v4612_v4  ;;  %v258_v8 = vpack.c.bf16 %v246_v5, %v246_v5  ;;  %v260_v9 = vpack.c.bf16 %v254_v6, %v254_v6  ;;  %v4078_v3 = vld [vmem:[#allocation8 + $0x2a4] ss:$12 sps:$4 sm:$0xff]   ;;  %v4076_v5 = vld [vmem:[#allocation8 + $0x2a0] ss:$12 sps:$4 sm:$0xff]  }
  0x65   :  { %776 = vmatprep.subr.bf16.mxu0 %v3985_v24  ;;  %v4081_v6 = vld [vmem:[#allocation8 + $0x28c] ss:$12 sps:$4 sm:$0xff]  }
  0x66   :  { %816 = vmatpush1.bf16.msra.mxu1 %v4013_v30  ;;  %v259_v10 = vpack.c.bf16 %v250_v7, %v250_v7  ;;  %v262_v11 = vpack.i.b16 %v258_v8, %v258_v8  ;;  %v276_v12 = vpack.i.b16 %v260_v9, %v260_v9  ;;  %v4079_v7 = vld [vmem:[#allocation8 + $0x288] ss:$12 sps:$4 sm:$0xff]   ;;  %v4082_v9 = vld [vmem:[#allocation8 + $0x270] ss:$12 sps:$4 sm:$0xff]  }
  0x67   :  { %817 = vmatprep.subr.bf16.mxu1 %v4021_v32  ;;  %v4084_v8 = vld [vmem:[#allocation8 + $0x274] ss:$12 sps:$4 sm:$0xff]  }
  0x68   :  { %777 = vmatpush1.bf16.msra.mxu0 %v3983_v27  ;;  %v269_v13 = vpack.i.b16 %v259_v10, %v259_v10  ;;  %v267_v15 = vrot.slane %v262_v11, %v4608_v63  ;;  %v281_v16 = vrot.slane %v276_v12, %v4608_v63  ;;  %v4087_v10 = vld [vmem:[#allocation8 + $0x25c] ss:$12 sps:$4 sm:$0xff]   ;;  %v4085_v11 = vld [vmem:[#allocation8 + $0x258] ss:$12 sps:$4 sm:$0xff]  }
  0x69   :  { %778 = vmatprep.subr.bf16.mxu0 %v3988_v29  ;;  %v4044_v29 = vld [vmem:[#allocation8 + $0xb0] ss:$12 sps:$4 sm:$0xff]  }
  0x6a   :  { %818 = vmatpush1.bf16.msra.mxu1 %v4019_v35  ;;  %v274_v19 = vrot.slane %v269_v13, %v4608_v63  ;;  %v4046_v35 = vld [vmem:[#allocation8 + $0x230] ss:$12 sps:$4 sm:$0xff]   ;;  %v4088_v13 = vld [vmem:[#allocation8 + $0x240] ss:$12 sps:$4 sm:$0xff]  }
  0x6b   :  { %819 = vmatprep.subr.bf16.mxu1 %v4027_v37  ;;  %v4047_v37 = vld [vmem:[#allocation8 + $0x98] ss:$12 sps:$4 sm:$0xff]  }
  0x6c   :  { %779 = vmatpush1.bf16.msra.mxu0 %v3986_v31  ;;  %v4090_v12 = vld [vmem:[#allocation8 + $0x244] ss:$12 sps:$4 sm:$0xff]  }
  0x6d   :  { %780 = vmatprep.subr.bf16.mxu0 %v3991_v33 }
  0x6e   :  { %820 = vmatpush1.bf16.msra.mxu1 %v4025_v38  ;;  %v4048_v38 = vld [vmem:[#allocation8 + $0x140] ss:$12 sps:$4 sm:$0xff]  }
  0x6f   :  { %821 = vmatprep.subr.bf16.mxu1 %v4033_v40  ;;  %v4050_v40 = vld [vmem:[#allocation8 + $0x80] ss:$12 sps:$4 sm:$0xff]  }
  0x70   :  { %781 = vmatpush1.bf16.msra.mxu0 %v3989_v34  ;;  %v4045_v34 = vld [vmem:[#allocation8 + $0x158] ss:$12 sps:$4 sm:$0xff]  }
  0x71   :  { %782 = vmatprep.subr.bf16.mxu0 %v3994_v36 }
  0x72   :  { %822 = vmatpush1.bf16.msra.mxu1 %v4031_v42  ;;  %v4052_v42 = vld [vmem:[#allocation8 + $0x200] ss:$12 sps:$4 sm:$0xff]  }
  0x73   :  { %823 = vmatprep.subr.bf16.mxu1 %v4039_v56  ;;  %v4069_v56 = vld [vmem:[#allocation8 + $0x2ec] ss:$12 sps:$4 sm:$0xff]  }
  0x74   :  { %783 = vmatpush1.bf16.msra.mxu0 %v3992_v39  ;;  %v4049_v39 = vld [vmem:[#allocation8 + $0x218] ss:$12 sps:$4 sm:$0xff]  }
  0x75   :  { %784 = vmatprep.subr.bf16.mxu0 %v4000_v41  ;;  %v4051_v41 = vld [vmem:[#allocation8 + $0x128] ss:$12 sps:$4 sm:$0xff]  }
  0x76   :  { %824 = vmatpush1.bf16.msra.mxu1 %v4037_v57  ;;  %v4066_v57 = vld [vmem:[#allocation8 + $0x188] ss:$12 sps:$4 sm:$0xff]  }
  0x77   :  { %3686 = vmatprep.subr.bf16.mxu1 %v4043_v60  ;;  %v4070_v60 = vld [vmem:[#allocation8 + $0x2d0] ss:$12 sps:$4 sm:$0xff]  }
  0x78   :  { %785 = vmatpush2.bf16.msra.mxu0 %v3998_v43  ;;  %v4053_v43 = vld [vmem:[#allocation8 + $0x68] ss:$12 sps:$4 sm:$0xff]  }
  0x79   :  { %786 = vmatprep.subr.bf16.mxu0 %v4006_v44  ;;  %v4054_v44 = vld [vmem:[#allocation8 + $0x110] ss:$12 sps:$4 sm:$0xff]  }
  0x7c   :  { %787 = vmatpush2.bf16.msra.mxu0 %v4004_v45  ;;  %v4055_v45 = vld [vmem:[#allocation8 + $0x1e8] ss:$12 sps:$4 sm:$0xff]  }
  0x7d   :  { %788 = vmatprep.subr.bf16.mxu0 %v4012_v46  ;;  %v4056_v46 = vld [vmem:[#allocation8 + $0x50] ss:$12 sps:$4 sm:$0xff]  }
  0x80   :  { %789 = vmatpush2.bf16.msra.mxu0 %v4010_v47  ;;  %v4057_v47 = vld [vmem:[#allocation8 + $0xf8] ss:$12 sps:$4 sm:$0xff]  }
  0x81   :  { %790 = vmatprep.subr.bf16.mxu0 %v4018_v48  ;;  %v4058_v48 = vld [vmem:[#allocation8 + $0x1d0] ss:$12 sps:$4 sm:$0xff]  }
  0x84   :  { %791 = vmatpush2.bf16.msra.mxu0 %v4016_v49  ;;  %v4059_v49 = vld [vmem:[#allocation8 + $0x38] ss:$12 sps:$4 sm:$0xff]  }
  0x85   :  { %792 = vmatprep.subr.bf16.mxu0 %v4024_v50  ;;  %v4060_v50 = vld [vmem:[#allocation8 + $0xe0] ss:$12 sps:$4 sm:$0xff]  }
  0x88   :  { %793 = vmatpush2.bf16.msra.mxu0 %v4022_v51  ;;  %v4061_v51 = vld [vmem:[#allocation8 + $0x1b8] ss:$12 sps:$4 sm:$0xff]  }
  0x89   :  { %794 = vmatprep.subr.bf16.mxu0 %v4030_v52  ;;  %v4062_v52 = vld [vmem:[#allocation8 + $0x20] ss:$12 sps:$4 sm:$0xff]  }
  0x8c   :  { %795 = vmatpush2.bf16.msra.mxu0 %v4028_v53  ;;  %v4063_v53 = vld [vmem:[#allocation8 + $0xc8] ss:$12 sps:$4 sm:$0xff]  }
  0x8d   :  { %796 = vmatprep.subr.bf16.mxu0 %v4036_v54  ;;  %v4064_v54 = vld [vmem:[#allocation8 + $0x1a0] ss:$12 sps:$4 sm:$0xff]  }
  0x90   :  { %797 = vmatpush2.bf16.msra.mxu0 %v4034_v55  ;;  %v4065_v55 = vld [vmem:[#allocation8 + $0x8] ss:$12 sps:$4 sm:$0xff]  }
  0x91   :  { %798 = vmatprep.subr.bf16.mxu0 %v4042_v58  ;;  %v4067_v58 = vld [vmem:[#allocation8 + $0x2e8] ss:$12 sps:$4 sm:$0xff]  }
  0x94   :  { %799 = vmatpush2.bf16.msra.mxu0 %v4040_v59  ;;  %v4072_v59 = vld [vmem:[#allocation8 + $0x2d4] ss:$12 sps:$4 sm:$0xff]  }
  0x95   :  { %3849 = vmatprep.subr.bf16.mxu0 %v4539_v0 }
 0x117   :  { %v191_v14 = vpop.f32.mrf.mxu0 }
 0x118   :  { %v238_v17 = vpack.c.bf16 %v191_v14, %v191_v14  ;;  %v232_v18 = vpop.f32.mrf.mxu1  ;;  %v4093_v14 = vld [vmem:[#allocation8 + $0x3ac] ss:$12 sps:$4 sm:$0xff]  }
 0x119   :  { %v240_v20 = vpack.c.bf16 %v232_v18, %v232_v18  ;;  %v193_v21 = vpop.f32.mrf.mxu0  ;;  %v4099_v18 = vld [vmem:[#allocation8 + $0x37c] ss:$12 sps:$4 sm:$0xff]  }
 0x11a   :  { %v239_v22 = vpack.c.bf16 %v193_v21, %v193_v21  ;;  %v3847_v23 = vpop.f32.mrf.mxu1  ;;  %v282_v24 = vadd.bf16 %v267_v15, %v238_v17  ;;  %v4091_v15 = vld [vmem:[#allocation8 + $0x3a8] ss:$12 sps:$4 sm:$0xff]   ;;  %v4094_v17 = vld [vmem:[#allocation8 + $0x390] ss:$12 sps:$4 sm:$0xff]   ;;  %v4100_v21 = vld [vmem:[#allocation8 + $0x360] ss:$12 sps:$4 sm:$0xff]  }
 0x11b   :  { %v284_v25 = vadd.bf16 %v281_v16, %v240_v20  ;;  %v195_v26 = vpop.f32.mrf.mxu0  ;;  %v4096_v16 = vld [vmem:[#allocation8 + $0x394] ss:$12 sps:$4 sm:$0xff]   ;;  %v4102_v20 = vld [vmem:[#allocation8 + $0x364] ss:$12 sps:$4 sm:$0xff]   ;;  %v4105_v23 = vld [vmem:[#allocation8 + $0x34c] ss:$12 sps:$4 sm:$0xff]  }
 0x11c   :  { %v283_v27 = vadd.bf16 %v274_v19, %v239_v22  ;;  %v235_v28 = vpop.f32.mrf.mxu1  ;;  %v285_v36 = vmax.bf16 %v4540_v1, %v282_v24  ;;  %v4097_v19 = vld [vmem:[#allocation8 + $0x378] ss:$12 sps:$4 sm:$0xff]   ;;  %v4115_v22 = vld [vmem:[#allocation8 + $0x468] ss:$12 sps:$4 sm:$0xff]  }
 0x11d   :  { %v4621_v30 = vmax.bf16 %v4540_v1, %v284_v25  ;;  %v196_v31 = vpop.f32.mrf.mxu0  ;;  %v4117_v24 = vld [vmem:[#allocation8 + $0x46c] ss:$12 sps:$4 sm:$0xff]   ;;  %v4103_v25 = vld [vmem:[#allocation8 + $0x348] ss:$12 sps:$4 sm:$0xff]  }
 0x11e   :  { %v3848_v32 = vpop.f32.mrf.mxu1  ;;  %v286_v33 = vmax.bf16 %v4540_v1, %v283_v27  ;;  %v4108_v26 = vld [vmem:[#allocation8 + $0x334] ss:$12 sps:$4 sm:$0xff]   ;;  %v4118_v27 = vld [vmem:[#allocation8 + $0x450] ss:$12 sps:$4 sm:$0xff]   ;;  %v4122_v31 = vld [vmem:[#allocation8 + $0x438] ss:$12 sps:$4 sm:$0xff]  }
 0x11f   :  { %842 = vmatmul.mubr.bf16.vlgmr.msra.gmra.mxu1 %v4621_v30  ;;  %v4120_v28 = vld [vmem:[#allocation8 + $0x454] ss:$12 sps:$4 sm:$0xff]   ;;  %v4111_v32 = vld [vmem:[#allocation8 + $0x31c] ss:$12 sps:$4 sm:$0xff]  }
 0x120   :  { %3687 = vmatpush3.bf16.msra.mxu1 %v4044_v29  ;;  %800 = vmatprep.mubr.bf16.mxu0 %v286_v33  ;;  %v4124_v29 = vld [vmem:[#allocation8 + $0x43c] ss:$12 sps:$4 sm:$0xff]  }
 0x121   :  { %882 = vmatprep.mubr.bf16.mxu1 %v286_v33  ;;  %801 = vmatmul.mubr.bf16.vlgmr.msra.gmra.mxu0 %v285_v36  ;;  %v4128_v33 = vld [vmem:[#allocation8 + $0x424] ss:$12 sps:$4 sm:$0xff]  }
 0x122   :  { %3688 = vmatprep.subr.bf16.mxu1 %v4045_v34  ;;  %3850 = vmatpush3.bf16.msra.mxu0 %v4046_v35  ;;  %v4109_v34 = vld [vmem:[#allocation8 + $0x318] ss:$12 sps:$4 sm:$0xff]   ;;  %v4126_v35 = vld [vmem:[#allocation8 + $0x420] ss:$12 sps:$4 sm:$0xff]  }
 0x123   :  { %3851 = vmatprep.subr.bf16.mxu0 %v4539_v0  ;;  %3865 = vmatprep.mubr.msk.bf16.mxu0 %vm4541_vm0, %v4539_v0 }
 0x124   :  { %3689 = vmatpush3.bf16.msra.mxu1 %v4047_v37  ;;  %v4132_v37 = vld [vmem:[#allocation8 + $0x40c] ss:$12 sps:$4 sm:$0xff]  }
 0x125   :  { %3690 = vmatprep.subr.bf16.mxu1 %v4048_v38  ;;  %v4112_v38 = vld [vmem:[#allocation8 + $0x300] ss:$12 sps:$4 sm:$0xff]  }
 0x126   :  { %3852 = vmatpush3.bf16.msra.mxu0 %v4049_v39  ;;  %v4130_v39 = vld [vmem:[#allocation8 + $0x408] ss:$12 sps:$4 sm:$0xff]  }
 0x127   :  { %3853 = vmatprep.subr.bf16.mxu0 %v4539_v0 }
 0x128   :  { %3691 = vmatpush3.bf16.msra.mxu1 %v4050_v40  ;;  %v4136_v40 = vld [vmem:[#allocation8 + $0x3f4] ss:$12 sps:$4 sm:$0xff]  }
 0x129   :  { %3692 = vmatprep.subr.bf16.mxu1 %v4051_v41  ;;  %v4134_v41 = vld [vmem:[#allocation8 + $0x3f0] ss:$12 sps:$4 sm:$0xff]  }
 0x12a   :  { %3854 = vmatpush3.bf16.msra.mxu0 %v4052_v42  ;;  %v4140_v42 = vld [vmem:[#allocation8 + $0x3dc] ss:$12 sps:$4 sm:$0xff]  }
 0x12b   :  { %3855 = vmatprep.subr.bf16.mxu0 %v4539_v0 }
 0x12c   :  { %3693 = vmatpush3.bf16.msra.mxu1 %v4053_v43  ;;  %v4138_v43 = vld [vmem:[#allocation8 + $0x3d8] ss:$12 sps:$4 sm:$0xff]  }
 0x12d   :  { %3694 = vmatprep.subr.bf16.mxu1 %v4054_v44  ;;  %v4144_v44 = vld [vmem:[#allocation8 + $0x3c4] ss:$12 sps:$4 sm:$0xff]  }
 0x12e   :  { %3856 = vmatpush3.bf16.msra.mxu0 %v4055_v45  ;;  %v4142_v45 = vld [vmem:[#allocation8 + $0x3c0] ss:$12 sps:$4 sm:$0xff]  }
 0x12f   :  { %3857 = vmatprep.subr.bf16.mxu0 %v4539_v0 }
 0x130   :  { %3695 = vmatpush3.bf16.msra.mxu1 %v4056_v46  ;;  %v4146_v46 = vld [vmem:[#allocation8 + $0x3b0] ss:$12 sps:$4 sm:$0xff]  }
 0x131   :  { %3696 = vmatprep.subr.bf16.mxu1 %v4057_v47  ;;  %v933_v47 = vld [vmem:[#allocation10] sm:$0x7] }
 0x132   :  { %3858 = vmatpush3.bf16.msra.mxu0 %v4058_v48  ;;  %v938_v48 = vrot.slane %v933_v47, %v4608_v63 }
 0x133   :  { %3859 = vmatprep.subr.bf16.mxu0 %v4539_v0 }
 0x134   :  { %3697 = vmatpush3.bf16.msra.mxu1 %v4059_v49  ;;  %v942_v49 = vrot.slane %v933_v47, %v4612_v4 }
 0x135   :  { %3698 = vmatprep.subr.bf16.mxu1 %v4060_v50  ;;  %v950_v50 = vpack.c.bf16 %v938_v48, %v938_v48  ;;  %v4158_v48 = vld [vmem:[#allocation8 + $0x278] ss:$12 sps:$4 sm:$0xff]  }
 0x136   :  { %3860 = vmatpush3.bf16.msra.mxu0 %v4061_v51  ;;  %v951_v51 = vpack.c.bf16 %v942_v49, %v942_v49  ;;  %v4159_v49 = vld [vmem:[#allocation8 + $0x320] ss:$12 sps:$4 sm:$0xff]  }
 0x137   :  { %3861 = vmatprep.subr.bf16.mxu0 %v4539_v0 }
 0x138   :  { %3699 = vmatpush3.bf16.msra.mxu1 %v4062_v52 }
 0x139   :  { %3700 = vmatprep.subr.bf16.mxu1 %v4063_v53  ;;  %v954_v53 = vpack.i.b16 %v950_v50, %v950_v50  ;;  %v4160_v50 = vld [vmem:[#allocation8 + $0x260] ss:$12 sps:$4 sm:$0xff]  }
 0x13a   :  { %3862 = vmatpush3.bf16.msra.mxu0 %v4064_v54  ;;  %v961_v54 = vpack.i.b16 %v951_v51, %v951_v51  ;;  %v4161_v51 = vld [vmem:[#allocation8 + $0x308] ss:$12 sps:$4 sm:$0xff]  }
 0x13b   :  { %3863 = vmatprep.subr.bf16.mxu0 %v4539_v0 }
 0x13c   :  { %3701 = vmatpush3.bf16.msra.mxu1 %v4065_v55 }
 0x13d   :  { %1461 = vmatprep.subr.bf16.mxu1 %v4069_v56 }
 0x13e   :  { %3864 = vmatpush3.bf16.msra.mxu0 %v4066_v57 }
 0x13f   :  { %883 = vmatmul.mubr.bf16.vlgmr.msra.gmra.mxu1 %v285_v36  ;;  %1502 = vmatprep.subr.bf16.mxu0 %v4117_v24  ;;  %v4114_v36 = vld [vmem:[#allocation8 + $0x304] ss:$12 sps:$4 sm:$0xff]  }
 0x140   :  { %1462 = vmatpush1.bf16.msra.mxu1 %v4067_v58  ;;  %v959_v58 = vrot.slane %v954_v53, %v4608_v63  ;;  %v4165_v53 = vld [vmem:[#allocation8 + $0x52c] ss:$12 sps:$4 sm:$0xff]  }
 0x141   :  { %3866 = vmatmul.mubr.bf16.vlgmr.msra.gmra.mxu0 %v4621_v30  ;;  %1463 = vmatprep.subr.bf16.mxu1 %v4072_v59  ;;  %v4106_v30 = vld [vmem:[#allocation8 + $0x330] ss:$12 sps:$4 sm:$0xff]  }
 0x142   :  { %1534 = vmatprep.mubr.bf16.mxu0 %v4540_v1  ;;  %1503 = vmatpush1.bf16.msra.mxu0 %v4115_v22 }
 0x143   :  { %1504 = vmatprep.subr.bf16.mxu0 %v4120_v28 }
 0x144   :  { %1464 = vmatpush1.bf16.msra.mxu1 %v4070_v60 }
 0x145   :  { %1465 = vmatprep.subr.bf16.mxu1 %v4075_v61 }
 0x146   :  { %1505 = vmatpush1.bf16.msra.mxu0 %v4118_v27 }
 0x147   :  { %1506 = vmatprep.subr.bf16.mxu0 %v4124_v29 }
 0x148   :  { %1466 = vmatpush1.bf16.msra.mxu1 %v4073_v62 }
 0x149   :  { %1467 = vmatprep.subr.bf16.mxu1 %v4078_v3  ;;  %v966_v3 = vrot.slane %v961_v54, %v4608_v63  ;;  %v4163_v54 = vld [vmem:[#allocation8 + $0x528] ss:$12 sps:$4 sm:$0xff]  }
 0x14a   :  { %1507 = vmatpush1.bf16.msra.mxu0 %v4122_v31 }
 0x14b   :  { %1508 = vmatprep.subr.bf16.mxu0 %v4128_v33 }
 0x14c   :  { %1468 = vmatpush1.bf16.msra.mxu1 %v4076_v5 }
 0x14d   :  { %1469 = vmatprep.subr.bf16.mxu1 %v4081_v6 }
 0x14e   :  { %1509 = vmatpush1.bf16.msra.mxu0 %v4126_v35 }
 0x14f   :  { %1510 = vmatprep.subr.bf16.mxu0 %v4132_v37  ;;  %v4148_v37 = vld [vmem:[#allocation8 + $0x2f0] ss:$12 sps:$4 sm:$0xff]  }
 0x150   :  { %1470 = vmatpush1.bf16.msra.mxu1 %v4079_v7 }
 0x151   :  { %1471 = vmatprep.subr.bf16.mxu1 %v4084_v8 }
 0x152   :  { %1511 = vmatpush1.bf16.msra.mxu0 %v4130_v39  ;;  %v4149_v39 = vld [vmem:[#allocation8 + $0x398] ss:$12 sps:$4 sm:$0xff]  }
 0x153   :  { %1512 = vmatprep.subr.bf16.mxu0 %v4136_v40  ;;  %v4150_v40 = vld [vmem:[#allocation8 + $0x2d8] ss:$12 sps:$4 sm:$0xff]  }
 0x154   :  { %1472 = vmatpush1.bf16.msra.mxu1 %v4082_v9 }
 0x155   :  { %1473 = vmatprep.subr.bf16.mxu1 %v4087_v10 }
 0x156   :  { %1513 = vmatpush1.bf16.msra.mxu0 %v4134_v41  ;;  %v4151_v41 = vld [vmem:[#allocation8 + $0x380] ss:$12 sps:$4 sm:$0xff]  }
 0x157   :  { %1514 = vmatprep.subr.bf16.mxu0 %v4140_v42  ;;  %v4152_v42 = vld [vmem:[#allocation8 + $0x2c0] ss:$12 sps:$4 sm:$0xff]  }
 0x158   :  { %1474 = vmatpush1.bf16.msra.mxu1 %v4085_v11 }
 0x159   :  { %1475 = vmatprep.subr.bf16.mxu1 %v4090_v12  ;;  %v4121_v12 = vld [vmem:[#allocation8 + $0x470] ss:$12 sps:$4 sm:$0xff]  }
 0x15a   :  { %1515 = vmatpush1.bf16.msra.mxu0 %v4138_v43  ;;  %v4153_v43 = vld [vmem:[#allocation8 + $0x368] ss:$12 sps:$4 sm:$0xff]  }
 0x15b   :  { %1516 = vmatprep.subr.bf16.mxu0 %v4144_v44  ;;  %v4154_v44 = vld [vmem:[#allocation8 + $0x2a8] ss:$12 sps:$4 sm:$0xff]  }
 0x15c   :  { %1476 = vmatpush1.bf16.msra.mxu1 %v4088_v13 }
 0x15d   :  { %1477 = vmatprep.subr.bf16.mxu1 %v4093_v14  ;;  %v4125_v14 = vld [vmem:[#allocation8 + $0x458] ss:$12 sps:$4 sm:$0xff]  }
 0x15e   :  { %1517 = vmatpush1.bf16.msra.mxu0 %v4142_v45  ;;  %v4155_v45 = vld [vmem:[#allocation8 + $0x350] ss:$12 sps:$4 sm:$0xff]  }
 0x15f   :  { %3717 = vmatprep.subr.bf16.mxu0 %v4146_v46  ;;  %v4156_v46 = vld [vmem:[#allocation8 + $0x290] ss:$12 sps:$4 sm:$0xff]  }
 0x160   :  { %1478 = vmatpush2.bf16.msra.mxu1 %v4091_v15  ;;  %v4129_v15 = vld [vmem:[#allocation8 + $0x440] ss:$12 sps:$4 sm:$0xff]  }
 0x161   :  { %1479 = vmatprep.subr.bf16.mxu1 %v4096_v16  ;;  %v4133_v16 = vld [vmem:[#allocation8 + $0x428] ss:$12 sps:$4 sm:$0xff]  }
 0x164   :  { %1480 = vmatpush2.bf16.msra.mxu1 %v4094_v17  ;;  %v946_v17 = vrot.slane %v933_v47, %v4610_v2  ;;  %v4157_v47 = vld [vmem:[#allocation8 + $0x338] ss:$12 sps:$4 sm:$0xff]  }
 0x165   :  { %1481 = vmatprep.subr.bf16.mxu1 %v4099_v18  ;;  %v4137_v18 = vld [vmem:[#allocation8 + $0x410] ss:$12 sps:$4 sm:$0xff]  }
 0x168   :  { %1482 = vmatpush2.bf16.msra.mxu1 %v4097_v19  ;;  %v952_v19 = vpack.c.bf16 %v946_v17, %v946_v17  ;;  %v4196_v17 = vld [vmem:[#allocation8 + $0x5a0] ss:$12 sps:$4 sm:$0xff]  }
 0x169   :  { %1483 = vmatprep.subr.bf16.mxu1 %v4102_v20  ;;  %v4141_v20 = vld [vmem:[#allocation8 + $0x3f8] ss:$12 sps:$4 sm:$0xff]  }
 0x16a   :  { %v968_v22 = vpack.i.b16 %v952_v19, %v952_v19  ;;  %v4213_v19 = vld [vmem:[#allocation8 + $0x6ac] ss:$12 sps:$4 sm:$0xff]  }
 0x16c   :  { %1484 = vmatpush2.bf16.msra.mxu1 %v4100_v21 }
 0x16d   :  { %1485 = vmatprep.subr.bf16.mxu1 %v4105_v23 }
 0x170   :  { %1486 = vmatpush2.bf16.msra.mxu1 %v4103_v25 }
 0x171   :  { %1487 = vmatprep.subr.bf16.mxu1 %v4108_v26  ;;  %v4145_v26 = vld [vmem:[#allocation8 + $0x3e0] ss:$12 sps:$4 sm:$0xff]  }
 0x174   :  { %1488 = vmatpush2.bf16.msra.mxu1 %v4106_v30  ;;  %v973_v30 = vrot.slane %v968_v22, %v4608_v63  ;;  %v4215_v22 = vld [vmem:[#allocation8 + $0x690] ss:$12 sps:$4 sm:$0xff]  }
 0x175   :  { %1489 = vmatprep.subr.bf16.mxu1 %v4111_v32 }
 0x178   :  { %1490 = vmatpush2.bf16.msra.mxu1 %v4109_v34  ;;  %v4147_v34 = vld [vmem:[#allocation8 + $0x3c8] ss:$12 sps:$4 sm:$0xff]  }
 0x179   :  { %1491 = vmatprep.subr.bf16.mxu1 %v4114_v36 }
 0x17c   :  { %1492 = vmatpush2.bf16.msra.mxu1 %v4112_v38 }
 0x17d   :  { %3869 = vmatprep.subr.bf16.mxu1 %v4539_v0 }
 0x1df   :  { %v843_v52 = vpop.f32.mrf.mxu1 }
 0x1e1   :  { %v845_v55 = vpop.f32.mrf.mxu1  ;;  %v802_v56 = vpop.f32.mrf.mxu0 }
 0x1e2   :  { %v844_v57 = vadd.f32 %v843_v52, %v802_v56  ;;  %v4162_v52 = vld [vmem:[#allocation8 + $0x248] ss:$12 sps:$4 sm:$0xff]   ;;  %v4166_v56 = vld [vmem:[#allocation8 + $0x510] ss:$12 sps:$4 sm:$0xff]  }
 0x1e3   :  { %v847_v59 = vpop.f32.mrf.mxu1  ;;  %v804_v60 = vpop.f32.mrf.mxu0 }
 0x1e4   :  { %v930_v61 = vpack.c.bf16 %v844_v57, %v844_v57  ;;  %v846_v62 = vadd.f32 %v845_v55, %v804_v60  ;;  %v4168_v55 = vld [vmem:[#allocation8 + $0x514] ss:$12 sps:$4 sm:$0xff]   ;;  %v4171_v57 = vld [vmem:[#allocation8 + $0x4fc] ss:$12 sps:$4 sm:$0xff]   ;;  %v4174_v59 = vld [vmem:[#allocation8 + $0x4e4] ss:$12 sps:$4 sm:$0xff]  }
 0x1e5   :  { %v848_v5 = vpop.f32.mrf.mxu1  ;;  %v806_v6 = vpop.f32.mrf.mxu0  ;;  %v4172_v60 = vld [vmem:[#allocation8 + $0x4e0] ss:$12 sps:$4 sm:$0xff]  }
 0x1e6   :  { %v931_v7 = vpack.c.bf16 %v846_v62, %v846_v62  ;;  %v974_v8 = vadd.bf16 %v959_v58, %v930_v61  ;;  %v4169_v58 = vld [vmem:[#allocation8 + $0x4f8] ss:$12 sps:$4 sm:$0xff]   ;;  %v4175_v62 = vld [vmem:[#allocation8 + $0x4c8] ss:$12 sps:$4 sm:$0xff]   ;;  %v4178_v5 = vld [vmem:[#allocation8 + $0x4b0] ss:$12 sps:$4 sm:$0xff]  }
 0x1e7   :  { %v807_v9 = vpop.f32.mrf.mxu0  ;;  %v4177_v61 = vld [vmem:[#allocation8 + $0x4cc] ss:$12 sps:$4 sm:$0xff]   ;;  %v4183_v6 = vld [vmem:[#allocation8 + $0x49c] ss:$12 sps:$4 sm:$0xff]  }
 0x1e8   :  { %v975_v10 = vadd.bf16 %v966_v3, %v931_v7  ;;  %v4644_v13 = vmax.bf16 %v4540_v1, %v974_v8  ;;  %v4180_v3 = vld [vmem:[#allocation8 + $0x4b4] ss:$12 sps:$4 sm:$0xff]   ;;  %v4181_v7 = vld [vmem:[#allocation8 + $0x498] ss:$12 sps:$4 sm:$0xff]  }
 0x1e9   :  { %v4186_v8 = vld [vmem:[#allocation8 + $0x484] ss:$12 sps:$4 sm:$0xff]   ;;  %v4184_v9 = vld [vmem:[#allocation8 + $0x480] ss:$12 sps:$4 sm:$0xff]  }
 0x1ea   :  { %v978_v11 = vmax.bf16 %v4540_v1, %v975_v10  ;;  %v4189_v10 = vld [vmem:[#allocation8 + $0x5ec] ss:$12 sps:$4 sm:$0xff]  }
 0x1ec   :  { %1493 = vmatprep.mubr.bf16.mxu1 %v978_v11 }
 0x1ed   :  { %1494 = vmatmul.mubr.bf16.vlgmr.msra.gmra.mxu1 %v4644_v13 }
 0x1ee   :  { %3870 = vmatpush3.bf16.msra.mxu1 %v4121_v12  ;;  %3885 = vmatprep.mubr.msk.bf16.mxu1 %vm4541_vm0, %v4539_v0  ;;  %v4192_v12 = vld [vmem:[#allocation8 + $0x5d4] ss:$12 sps:$4 sm:$0xff]  }
 0x1ef   :  { %3871 = vmatprep.subr.bf16.mxu1 %v4539_v0 }
 0x1f2   :  { %3872 = vmatpush3.bf16.msra.mxu1 %v4125_v14  ;;  %v4195_v14 = vld [vmem:[#allocation8 + $0x5bc] ss:$12 sps:$4 sm:$0xff]  }
 0x1f3   :  { %3873 = vmatprep.subr.bf16.mxu1 %v4539_v0 }
 0x1f6   :  { %3874 = vmatpush3.bf16.msra.mxu1 %v4129_v15  ;;  %v4193_v15 = vld [vmem:[#allocation8 + $0x5b8] ss:$12 sps:$4 sm:$0xff]  }
 0x1f7   :  { %3875 = vmatprep.subr.bf16.mxu1 %v4539_v0 }
 0x1fa   :  { %3876 = vmatpush3.bf16.msra.mxu1 %v4133_v16  ;;  %v4198_v16 = vld [vmem:[#allocation8 + $0x5a4] ss:$12 sps:$4 sm:$0xff]  }
 0x1fb   :  { %3877 = vmatprep.subr.bf16.mxu1 %v4539_v0 }
 0x1fe   :  { %3878 = vmatpush3.bf16.msra.mxu1 %v4137_v18  ;;  %v4201_v18 = vld [vmem:[#allocation8 + $0x58c] ss:$12 sps:$4 sm:$0xff]  }
 0x1ff   :  { %v3702_v21 = vpop.f32.mrf.mxu1  ;;  %3879 = vmatprep.subr.bf16.mxu1 %v4539_v0 }
 0x201   :  { %v3703_v23 = vpop.f32.mrf.mxu1  ;;  %v924_v24 = vpop.f32.mrf.mxu0 }
 0x202   :  { %v3704_v25 = vadd.f32 %v3703_v23, %v3702_v21  ;;  %3880 = vmatpush3.bf16.msra.mxu1 %v4141_v20  ;;  %v4211_v20 = vld [vmem:[#allocation8 + $0x6a8] ss:$12 sps:$4 sm:$0xff]  }
 0x203   :  { %v3705_v27 = vpop.f32.mrf.mxu1  ;;  %v3867_v28 = vpop.f32.mrf.mxu0  ;;  %3881 = vmatprep.subr.bf16.mxu1 %v4539_v0  ;;  %v4199_v21 = vld [vmem:[#allocation8 + $0x588] ss:$12 sps:$4 sm:$0xff]  }
 0x204   :  { %v925_v29 = vadd.f32 %v3704_v25, %v924_v24  ;;  %v4217_v23 = vld [vmem:[#allocation8 + $0x694] ss:$12 sps:$4 sm:$0xff]   ;;  %v4202_v25 = vld [vmem:[#allocation8 + $0x570] ss:$12 sps:$4 sm:$0xff]  }
 0x205   :  { %v3706_v31 = vpop.f32.mrf.mxu1  ;;  %v927_v32 = vpop.f32.mrf.mxu0  ;;  %v4204_v24 = vld [vmem:[#allocation8 + $0x574] ss:$12 sps:$4 sm:$0xff]   ;;  %v4221_v27 = vld [vmem:[#allocation8 + $0x67c] ss:$12 sps:$4 sm:$0xff]  }
 0x206   :  { %v932_v33 = vpack.c.bf16 %v925_v29, %v925_v29  ;;  %3882 = vmatpush3.bf16.msra.mxu1 %v4145_v26  ;;  %v4219_v26 = vld [vmem:[#allocation8 + $0x678] ss:$12 sps:$4 sm:$0xff]   ;;  %v4207_v28 = vld [vmem:[#allocation8 + $0x55c] ss:$12 sps:$4 sm:$0xff]  }
 0x207   :  { %v3868_v35 = vpop.f32.mrf.mxu0  ;;  %3883 = vmatprep.subr.bf16.mxu1 %v4539_v0  ;;  %v4205_v29 = vld [vmem:[#allocation8 + $0x558] ss:$12 sps:$4 sm:$0xff]  }
 0x208   :  { %v976_v36 = vadd.bf16 %v973_v30, %v932_v33  ;;  %v4223_v30 = vld [vmem:[#allocation8 + $0x660] ss:$12 sps:$4 sm:$0xff]   ;;  %v4225_v31 = vld [vmem:[#allocation8 + $0x664] ss:$12 sps:$4 sm:$0xff]  }
 0x209   :  { %v4210_v32 = vld [vmem:[#allocation8 + $0x544] ss:$12 sps:$4 sm:$0xff]   ;;  %v4208_v33 = vld [vmem:[#allocation8 + $0x540] ss:$12 sps:$4 sm:$0xff]  }
 0x20a   :  { %v979_v38 = vmax.bf16 %v4540_v1, %v976_v36  ;;  %3884 = vmatpush3.bf16.msra.mxu1 %v4147_v34  ;;  %v4227_v34 = vld [vmem:[#allocation8 + $0x648] ss:$12 sps:$4 sm:$0xff]   ;;  %v4229_v35 = vld [vmem:[#allocation8 + $0x64c] ss:$12 sps:$4 sm:$0xff]  }
 0x20b   :  { %2196 = vmatprep.subr.bf16.mxu1 %v4213_v19  ;;  %v4233_v36 = vld [vmem:[#allocation8 + $0x634] ss:$12 sps:$4 sm:$0xff]  }
 0x20c   :  { %1535 = vmatmul.mubr.bf16.vlgmr.msra.gmra.mxu0 %v979_v38 }
 0x20d   :  { %3718 = vmatpush3.bf16.msra.mxu0 %v4148_v37  ;;  %1575 = vmatprep.mubr.bf16.mxu0 %v978_v11  ;;  %v4187_v11 = vld [vmem:[#allocation8 + $0x5e8] ss:$12 sps:$4 sm:$0xff]   ;;  %v4231_v37 = vld [vmem:[#allocation8 + $0x630] ss:$12 sps:$4 sm:$0xff]  }
 0x20e   :  { %3886 = vmatmul.mubr.bf16.vlgmr.msra.gmra.mxu1 %v979_v38  ;;  %3719 = vmatprep.subr.bf16.mxu0 %v4149_v39  ;;  %v4237_v38 = vld [vmem:[#allocation8 + $0x61c] ss:$12 sps:$4 sm:$0xff]   ;;  %v4235_v39 = vld [vmem:[#allocation8 + $0x618] ss:$12 sps:$4 sm:$0xff]  }
 0x20f   :  { %2228 = vmatprep.mubr.bf16.mxu1 %v4540_v1  ;;  %2197 = vmatpush1.bf16.msra.mxu1 %v4211_v20  ;;  %v4234_v20 = vld [vmem:[#allocation8 + $0x638] ss:$12 sps:$4 sm:$0xff]  }
 0x210   :  { %2198 = vmatprep.subr.bf16.mxu1 %v4217_v23  ;;  %v4238_v23 = vld [vmem:[#allocation8 + $0x620] ss:$12 sps:$4 sm:$0xff]  }
 0x211   :  { %3720 = vmatpush3.bf16.msra.mxu0 %v4150_v40  ;;  %v4241_v40 = vld [vmem:[#allocation8 + $0x604] ss:$12 sps:$4 sm:$0xff]  }
 0x212   :  { %3721 = vmatprep.subr.bf16.mxu0 %v4151_v41  ;;  %v4239_v41 = vld [vmem:[#allocation8 + $0x600] ss:$12 sps:$4 sm:$0xff]  }
 0x213   :  { %2199 = vmatpush1.bf16.msra.mxu1 %v4215_v22 }
 0x214   :  { %2200 = vmatprep.subr.bf16.mxu1 %v4221_v27 }
 0x215   :  { %3722 = vmatpush3.bf16.msra.mxu0 %v4152_v42  ;;  %v4243_v42 = vld [vmem:[#allocation8 + $0x5f0] ss:$12 sps:$4 sm:$0xff]  }
 0x216   :  { %3723 = vmatprep.subr.bf16.mxu0 %v4153_v43 }
 0x217   :  { %2201 = vmatpush1.bf16.msra.mxu1 %v4219_v26 }
 0x218   :  { %2202 = vmatprep.subr.bf16.mxu1 %v4225_v31 }
 0x219   :  { %3724 = vmatpush3.bf16.msra.mxu0 %v4154_v44 }
 0x21a   :  { %3725 = vmatprep.subr.bf16.mxu0 %v4155_v45 }
 0x21b   :  { %2203 = vmatpush1.bf16.msra.mxu1 %v4223_v30 }
 0x21c   :  { %2204 = vmatprep.subr.bf16.mxu1 %v4229_v35  ;;  %v4245_v35 = vld [vmem:[#allocation8 + $0x5d8] ss:$12 sps:$4 sm:$0xff]  }
 0x21d   :  { %3726 = vmatpush3.bf16.msra.mxu0 %v4156_v46 }
 0x21e   :  { %3727 = vmatprep.subr.bf16.mxu0 %v4157_v47  ;;  %v1627_v47 = vld [vmem:[#allocation10 + $0x3] sm:$0x7] }
 0x21f   :  { %2205 = vmatpush1.bf16.msra.mxu1 %v4227_v34 }
 0x220   :  { %2206 = vmatprep.subr.bf16.mxu1 %v4233_v36  ;;  %v4246_v36 = vld [vmem:[#allocation8 + $0x518] ss:$12 sps:$4 sm:$0xff]  }
 0x221   :  { %3728 = vmatpush3.bf16.msra.mxu0 %v4158_v48  ;;  %v1632_v48 = vrot.slane %v1627_v47, %v4608_v63 }
 0x222   :  { %3729 = vmatprep.subr.bf16.mxu0 %v4159_v49  ;;  %v1636_v49 = vrot.slane %v1627_v47, %v4612_v4 }
 0x223   :  { %2207 = vmatpush1.bf16.msra.mxu1 %v4231_v37  ;;  %v4247_v37 = vld [vmem:[#allocation8 + $0x5c0] ss:$12 sps:$4 sm:$0xff]  }
 0x224   :  { %2208 = vmatprep.subr.bf16.mxu1 %v4237_v38  ;;  %v4248_v38 = vld [vmem:[#allocation8 + $0x500] ss:$12 sps:$4 sm:$0xff]  }
 0x225   :  { %3730 = vmatpush3.bf16.msra.mxu0 %v4160_v50  ;;  %v1644_v50 = vpack.c.bf16 %v1632_v48, %v1632_v48  ;;  %v4258_v48 = vld [vmem:[#allocation8 + $0x488] ss:$12 sps:$4 sm:$0xff]  }
 0x226   :  { %3731 = vmatprep.subr.bf16.mxu0 %v4161_v51  ;;  %v1645_v51 = vpack.c.bf16 %v1636_v49, %v1636_v49  ;;  %v4261_v49 = vld [vmem:[#allocation8 + $0x76c] ss:$12 sps:$4 sm:$0xff]  }
 0x227   :  { %2209 = vmatpush1.bf16.msra.mxu1 %v4235_v39  ;;  %v4249_v39 = vld [vmem:[#allocation8 + $0x5a8] ss:$12 sps:$4 sm:$0xff]  }
 0x228   :  { %2210 = vmatprep.subr.bf16.mxu1 %v4241_v40  ;;  %v4250_v40 = vld [vmem:[#allocation8 + $0x4e8] ss:$12 sps:$4 sm:$0xff]  }
 0x229   :  { %3732 = vmatpush3.bf16.msra.mxu0 %v4162_v52  ;;  %v1648_v52 = vpack.i.b16 %v1644_v50, %v1644_v50  ;;  %v4259_v50 = vld [vmem:[#allocation8 + $0x768] ss:$12 sps:$4 sm:$0xff]  }
 0x22a   :  { %2155 = vmatprep.subr.bf16.mxu0 %v4165_v53  ;;  %v1655_v53 = vpack.i.b16 %v1645_v51, %v1645_v51  ;;  %v4264_v51 = vld [vmem:[#allocation8 + $0x754] ss:$12 sps:$4 sm:$0xff]  }
 0x22b   :  { %2211 = vmatpush1.bf16.msra.mxu1 %v4239_v41  ;;  %v4251_v41 = vld [vmem:[#allocation8 + $0x590] ss:$12 sps:$4 sm:$0xff]  }
 0x22c   :  { %1576 = vmatmul.mubr.bf16.vlgmr.msra.gmra.mxu0 %v4644_v13  ;;  %v4190_v13 = vld [vmem:[#allocation8 + $0x5d0] ss:$12 sps:$4 sm:$0xff]   ;;  %3748 = vmatprep.subr.bf16.mxu1 %v4243_v42 }
 0x22d   :  { %2156 = vmatpush1.bf16.msra.mxu0 %v4163_v54  ;;  %v4252_v42 = vld [vmem:[#allocation8 + $0x4d0] ss:$12 sps:$4 sm:$0xff]  }
 0x22e   :  { %2157 = vmatprep.subr.bf16.mxu0 %v4168_v55 }
 0x231   :  { %2158 = vmatpush1.bf16.msra.mxu0 %v4166_v56  ;;  %v1653_v56 = vrot.slane %v1648_v52, %v4608_v63  ;;  %v4262_v52 = vld [vmem:[#allocation8 + $0x750] ss:$12 sps:$4 sm:$0xff]  }
 0x232   :  { %2159 = vmatprep.subr.bf16.mxu0 %v4171_v57 }
 0x235   :  { %2160 = vmatpush1.bf16.msra.mxu0 %v4169_v58 }
 0x236   :  { %2161 = vmatprep.subr.bf16.mxu0 %v4174_v59 }
 0x239   :  { %2162 = vmatpush1.bf16.msra.mxu0 %v4172_v60 }
 0x23a   :  { %2163 = vmatprep.subr.bf16.mxu0 %v4177_v61  ;;  %v1660_v61 = vrot.slane %v1655_v53, %v4608_v63  ;;  %v4267_v53 = vld [vmem:[#allocation8 + $0x73c] ss:$12 sps:$4 sm:$0xff]  }
 0x23d   :  { %2164 = vmatpush1.bf16.msra.mxu0 %v4175_v62 }
 0x23e   :  { %2165 = vmatprep.subr.bf16.mxu0 %v4180_v3 }
 0x241   :  { %2166 = vmatpush1.bf16.msra.mxu0 %v4178_v5 }
 0x242   :  { %2167 = vmatprep.subr.bf16.mxu0 %v4183_v6 }
 0x245   :  { %2168 = vmatpush1.bf16.msra.mxu0 %v4181_v7 }
 0x246   :  { %2169 = vmatprep.subr.bf16.mxu0 %v4186_v8 }
 0x249   :  { %2170 = vmatpush1.bf16.msra.mxu0 %v4184_v9 }
 0x24a   :  { %2171 = vmatprep.subr.bf16.mxu0 %v4189_v10 }
 0x24d   :  { %2172 = vmatpush2.bf16.msra.mxu0 %v4187_v11 }
 0x24e   :  { %2173 = vmatprep.subr.bf16.mxu0 %v4192_v12  ;;  %v4214_v12 = vld [vmem:[#allocation8 + $0x6b0] ss:$12 sps:$4 sm:$0xff]  }
 0x251   :  { %2174 = vmatpush2.bf16.msra.mxu0 %v4190_v13 }
 0x252   :  { %2175 = vmatprep.subr.bf16.mxu0 %v4195_v14  ;;  %v4218_v14 = vld [vmem:[#allocation8 + $0x698] ss:$12 sps:$4 sm:$0xff]  }
 0x255   :  { %2176 = vmatpush2.bf16.msra.mxu0 %v4193_v15  ;;  %v4222_v15 = vld [vmem:[#allocation8 + $0x680] ss:$12 sps:$4 sm:$0xff]  }
 0x256   :  { %2177 = vmatprep.subr.bf16.mxu0 %v4198_v16  ;;  %v4226_v16 = vld [vmem:[#allocation8 + $0x668] ss:$12 sps:$4 sm:$0xff]  }
 0x259   :  { %2178 = vmatpush2.bf16.msra.mxu0 %v4196_v17  ;;  %v4230_v17 = vld [vmem:[#allocation8 + $0x650] ss:$12 sps:$4 sm:$0xff]  }
 0x25a   :  { %2179 = vmatprep.subr.bf16.mxu0 %v4201_v18  ;;  %v1640_v18 = vrot.slane %v1627_v47, %v4610_v2  ;;  %v4257_v47 = vld [vmem:[#allocation8 + $0x548] ss:$12 sps:$4 sm:$0xff]  }
 0x25c   :  { %v1646_v19 = vpack.c.bf16 %v1640_v18, %v1640_v18  ;;  %v4311_v18 = vld [vmem:[#allocation8 + $0x8d0] ss:$12 sps:$4 sm:$0xff]  }
 0x25d   :  { %2180 = vmatpush2.bf16.msra.mxu0 %v4199_v21 }
 0x25e   :  { %2181 = vmatprep.subr.bf16.mxu0 %v4204_v24  ;;  %v1662_v22 = vpack.i.b16 %v1646_v19, %v1646_v19  ;;  %v4313_v19 = vld [vmem:[#allocation8 + $0x8d4] ss:$12 sps:$4 sm:$0xff]  }
 0x261   :  { %2182 = vmatpush2.bf16.msra.mxu0 %v4202_v25 }
 0x262   :  { %2183 = vmatprep.subr.bf16.mxu0 %v4207_v28  ;;  %v1667_v28 = vrot.slane %v1662_v22, %v4608_v63  ;;  %v4315_v22 = vld [vmem:[#allocation8 + $0x8b8] ss:$12 sps:$4 sm:$0xff]  }
 0x265   :  { %2184 = vmatpush2.bf16.msra.mxu0 %v4205_v29  ;;  %v4242_v29 = vld [vmem:[#allocation8 + $0x608] ss:$12 sps:$4 sm:$0xff]  }
 0x266   :  { %2185 = vmatprep.subr.bf16.mxu0 %v4210_v32 }
 0x269   :  { %2186 = vmatpush2.bf16.msra.mxu0 %v4208_v33  ;;  %v4244_v33 = vld [vmem:[#allocation8 + $0x530] ss:$12 sps:$4 sm:$0xff]  }
 0x26a   :  { %3889 = vmatprep.subr.bf16.mxu0 %v4539_v0 }
 0x2ad   :  { %v1495_v43 = vpop.f32.mrf.mxu1 }
 0x2af   :  { %v1497_v44 = vpop.f32.mrf.mxu1 }
 0x2b1   :  { %v1499_v45 = vpop.f32.mrf.mxu1 }
 0x2b2   :  { %v4255_v45 = vld [vmem:[#allocation8 + $0x560] ss:$12 sps:$4 sm:$0xff]  }
 0x2b3   :  { %v1500_v46 = vpop.f32.mrf.mxu1 }
 0x2b4   :  { %v4256_v46 = vld [vmem:[#allocation8 + $0x4a0] ss:$12 sps:$4 sm:$0xff]  }
 0x2cc   :  { %v1536_v54 = vpop.f32.mrf.mxu0 }
 0x2cd   :  { %v1537_v55 = vadd.f32 %v1536_v54, %v1495_v43  ;;  %v4253_v43 = vld [vmem:[#allocation8 + $0x578] ss:$12 sps:$4 sm:$0xff]  }
 0x2ce   :  { %v1538_v57 = vpop.f32.mrf.mxu0  ;;  %v1617_v58 = vpop.f32.mrf.mxu1  ;;  %v4265_v54 = vld [vmem:[#allocation8 + $0x738] ss:$12 sps:$4 sm:$0xff]  }
 0x2cf   :  { %v1623_v59 = vpack.c.bf16 %v1537_v55, %v1537_v55  ;;  %v1539_v60 = vadd.f32 %v1538_v57, %v1497_v44  ;;  %v4254_v44 = vld [vmem:[#allocation8 + $0x4b8] ss:$12 sps:$4 sm:$0xff]  }
 0x2d0   :  { %v1540_v62 = vpop.f32.mrf.mxu0  ;;  %v3887_v3 = vpop.f32.mrf.mxu1  ;;  %v4270_v55 = vld [vmem:[#allocation8 + $0x724] ss:$12 sps:$4 sm:$0xff]   ;;  %v4273_v57 = vld [vmem:[#allocation8 + $0x70c] ss:$12 sps:$4 sm:$0xff]  }
 0x2d1   :  { %v1624_v5 = vpack.c.bf16 %v1539_v60, %v1539_v60  ;;  %v1668_v6 = vadd.bf16 %v1653_v56, %v1623_v59  ;;  %v4268_v56 = vld [vmem:[#allocation8 + $0x720] ss:$12 sps:$4 sm:$0xff]   ;;  %v4274_v60 = vld [vmem:[#allocation8 + $0x6f0] ss:$12 sps:$4 sm:$0xff]   ;;  %v4277_v62 = vld [vmem:[#allocation8 + $0x6d8] ss:$12 sps:$4 sm:$0xff]  }
 0x2d2   :  { %v1541_v7 = vpop.f32.mrf.mxu0  ;;  %v1620_v8 = vpop.f32.mrf.mxu1  ;;  %v4276_v59 = vld [vmem:[#allocation8 + $0x6f4] ss:$12 sps:$4 sm:$0xff]   ;;  %v4282_v3 = vld [vmem:[#allocation8 + $0x6c4] ss:$12 sps:$4 sm:$0xff]  }
 0x2d3   :  { %v1669_v9 = vadd.bf16 %v1660_v61, %v1624_v5  ;;  %v4668_v13 = vmax.bf16 %v4540_v1, %v1668_v6  ;;  %v4279_v61 = vld [vmem:[#allocation8 + $0x6dc] ss:$12 sps:$4 sm:$0xff]   ;;  %v4280_v5 = vld [vmem:[#allocation8 + $0x6c0] ss:$12 sps:$4 sm:$0xff]  }
 0x2d4   :  { %v3888_v10 = vpop.f32.mrf.mxu1  ;;  %v4285_v6 = vld [vmem:[#allocation8 + $0x82c] ss:$12 sps:$4 sm:$0xff]   ;;  %v4283_v7 = vld [vmem:[#allocation8 + $0x828] ss:$12 sps:$4 sm:$0xff]  }
 0x2d5   :  { %v1672_v11 = vmax.bf16 %v4540_v1, %v1669_v9  ;;  %v4288_v8 = vld [vmem:[#allocation8 + $0x814] ss:$12 sps:$4 sm:$0xff]   ;;  %v4286_v9 = vld [vmem:[#allocation8 + $0x810] ss:$12 sps:$4 sm:$0xff]  }
 0x2d6   :  { %v4291_v10 = vld [vmem:[#allocation8 + $0x7fc] ss:$12 sps:$4 sm:$0xff]  }
 0x2d7   :  { %2187 = vmatprep.mubr.bf16.mxu0 %v1672_v11 }
 0x2d8   :  { %2188 = vmatmul.mubr.bf16.vlgmr.msra.gmra.mxu0 %v4668_v13 }
 0x2d9   :  { %3890 = vmatpush3.bf16.msra.mxu0 %v4214_v12  ;;  %3905 = vmatprep.mubr.msk.bf16.mxu0 %vm4541_vm0, %v4539_v0  ;;  %v4294_v12 = vld [vmem:[#allocation8 + $0x7e4] ss:$12 sps:$4 sm:$0xff]  }
 0x2da   :  { %3891 = vmatprep.subr.bf16.mxu0 %v4539_v0 }
 0x2dd   :  { %3892 = vmatpush3.bf16.msra.mxu0 %v4218_v14  ;;  %v4297_v14 = vld [vmem:[#allocation8 + $0x7cc] ss:$12 sps:$4 sm:$0xff]  }
 0x2de   :  { %3893 = vmatprep.subr.bf16.mxu0 %v4539_v0 }
 0x2e1   :  { %3894 = vmatpush3.bf16.msra.mxu0 %v4222_v15  ;;  %v4309_v15 = vld [vmem:[#allocation8 + $0x8ec] ss:$12 sps:$4 sm:$0xff]  }
 0x2e2   :  { %3895 = vmatprep.subr.bf16.mxu0 %v4539_v0 }
 0x2e5   :  { %3896 = vmatpush3.bf16.msra.mxu0 %v4226_v16  ;;  %v4307_v16 = vld [vmem:[#allocation8 + $0x8e8] ss:$12 sps:$4 sm:$0xff]  }
 0x2e6   :  { %3897 = vmatprep.subr.bf16.mxu0 %v4539_v0 }
 0x2e9   :  { %3898 = vmatpush3.bf16.msra.mxu0 %v4230_v17  ;;  %v4295_v17 = vld [vmem:[#allocation8 + $0x7c8] ss:$12 sps:$4 sm:$0xff]  }
 0x2ea   :  { %3899 = vmatprep.subr.bf16.mxu0 %v4539_v0 }
 0x2ec   :  { %v3733_v21 = vpop.f32.mrf.mxu0 }
 0x2ed   :  { %3900 = vmatpush3.bf16.msra.mxu0 %v4234_v20  ;;  %v4300_v20 = vld [vmem:[#allocation8 + $0x7b4] ss:$12 sps:$4 sm:$0xff]  }
 0x2ee   :  { %v3734_v24 = vpop.f32.mrf.mxu0  ;;  %3901 = vmatprep.subr.bf16.mxu0 %v4539_v0 }
 0x2ef   :  { %v3735_v25 = vadd.f32 %v3734_v24, %v3733_v21  ;;  %v4298_v21 = vld [vmem:[#allocation8 + $0x7b0] ss:$12 sps:$4 sm:$0xff]  }
 0x2f0   :  { %v3736_v26 = vpop.f32.mrf.mxu0  ;;  %v4303_v24 = vld [vmem:[#allocation8 + $0x79c] ss:$12 sps:$4 sm:$0xff]  }
 0x2f1   :  { %v1618_v27 = vadd.f32 %v3735_v25, %v1617_v58  ;;  %3902 = vmatpush3.bf16.msra.mxu0 %v4238_v23  ;;  %v4271_v58 = vld [vmem:[#allocation8 + $0x708] ss:$12 sps:$4 sm:$0xff]   ;;  %v4301_v25 = vld [vmem:[#allocation8 + $0x798] ss:$12 sps:$4 sm:$0xff]   ;;  %v4319_v26 = vld [vmem:[#allocation8 + $0x8a0] ss:$12 sps:$4 sm:$0xff]  }
 0x2f2   :  { %v3737_v30 = vpop.f32.mrf.mxu0  ;;  %3903 = vmatprep.subr.bf16.mxu0 %v4539_v0  ;;  %v4317_v23 = vld [vmem:[#allocation8 + $0x8bc] ss:$12 sps:$4 sm:$0xff]  }
 0x2f3   :  { %v1625_v31 = vpack.c.bf16 %v1618_v27, %v1618_v27  ;;  %v4321_v27 = vld [vmem:[#allocation8 + $0x8a4] ss:$12 sps:$4 sm:$0xff]   ;;  %v4323_v30 = vld [vmem:[#allocation8 + $0x888] ss:$12 sps:$4 sm:$0xff]  }
 0x2f5   :  { %v1670_v32 = vadd.bf16 %v1667_v28, %v1625_v31  ;;  %3904 = vmatpush3.bf16.msra.mxu0 %v4242_v29  ;;  %v4306_v28 = vld [vmem:[#allocation8 + $0x784] ss:$12 sps:$4 sm:$0xff]   ;;  %v4304_v29 = vld [vmem:[#allocation8 + $0x780] ss:$12 sps:$4 sm:$0xff]  }
 0x2f6   :  { %2890 = vmatprep.subr.bf16.mxu0 %v4309_v15  ;;  %v4325_v31 = vld [vmem:[#allocation8 + $0x88c] ss:$12 sps:$4 sm:$0xff]  }
 0x2f7   :  { %v1673_v34 = vmax.bf16 %v4540_v1, %v1670_v32  ;;  %v4329_v32 = vld [vmem:[#allocation8 + $0x874] ss:$12 sps:$4 sm:$0xff]  }
 0x2f9   :  { %2229 = vmatmul.mubr.bf16.vlgmr.msra.gmra.mxu1 %v1673_v34  ;;  %3906 = vmatmul.mubr.bf16.vlgmr.msra.gmra.mxu0 %v1673_v34  ;;  %v4333_v34 = vld [vmem:[#allocation8 + $0x85c] ss:$12 sps:$4 sm:$0xff]  }
 0x2fa   :  { %3749 = vmatpush3.bf16.msra.mxu1 %v4244_v33  ;;  %2269 = vmatprep.mubr.bf16.mxu1 %v1672_v11  ;;  %v4289_v11 = vld [vmem:[#allocation8 + $0x7f8] ss:$12 sps:$4 sm:$0xff]   ;;  %v4327_v33 = vld [vmem:[#allocation8 + $0x870] ss:$12 sps:$4 sm:$0xff]  }
 0x2fb   :  { %3750 = vmatprep.subr.bf16.mxu1 %v4245_v35  ;;  %2922 = vmatprep.mubr.bf16.mxu0 %v4540_v1  ;;  %v4331_v35 = vld [vmem:[#allocation8 + $0x858] ss:$12 sps:$4 sm:$0xff]  }
 0x2fc   :  { %2891 = vmatpush1.bf16.msra.mxu0 %v4307_v16  ;;  %v4330_v16 = vld [vmem:[#allocation8 + $0x878] ss:$12 sps:$4 sm:$0xff]  }
 0x2fd   :  { %2892 = vmatprep.subr.bf16.mxu0 %v4313_v19  ;;  %v4334_v19 = vld [vmem:[#allocation8 + $0x860] ss:$12 sps:$4 sm:$0xff]  }
 0x2fe   :  { %3751 = vmatpush3.bf16.msra.mxu1 %v4246_v36  ;;  %v4337_v36 = vld [vmem:[#allocation8 + $0x844] ss:$12 sps:$4 sm:$0xff]  }
 0x2ff   :  { %3752 = vmatprep.subr.bf16.mxu1 %v4247_v37  ;;  %v4335_v37 = vld [vmem:[#allocation8 + $0x840] ss:$12 sps:$4 sm:$0xff]  }
 0x300   :  { %2893 = vmatpush1.bf16.msra.mxu0 %v4311_v18 }
 0x301   :  { %2894 = vmatprep.subr.bf16.mxu0 %v4317_v23 }
 0x302   :  { %3753 = vmatpush3.bf16.msra.mxu1 %v4248_v38  ;;  %v4339_v38 = vld [vmem:[#allocation8 + $0x830] ss:$12 sps:$4 sm:$0xff]  }
 0x303   :  { %3754 = vmatprep.subr.bf16.mxu1 %v4249_v39 }
 0x304   :  { %2895 = vmatpush1.bf16.msra.mxu0 %v4315_v22 }
 0x305   :  { %2896 = vmatprep.subr.bf16.mxu0 %v4321_v27 }
 0x306   :  { %3755 = vmatpush3.bf16.msra.mxu1 %v4250_v40 }
 0x307   :  { %3756 = vmatprep.subr.bf16.mxu1 %v4251_v41 }
 0x308   :  { %2897 = vmatpush1.bf16.msra.mxu0 %v4319_v26 }
 0x309   :  { %2898 = vmatprep.subr.bf16.mxu0 %v4325_v31  ;;  %v4341_v31 = vld [vmem:[#allocation8 + $0x818] ss:$12 sps:$4 sm:$0xff]  }
 0x30a   :  { %3757 = vmatpush3.bf16.msra.mxu1 %v4252_v42 }
 0x30b   :  { %3758 = vmatprep.subr.bf16.mxu1 %v4253_v43  ;;  %v2321_v43 = vld [vmem:[#allocation10 + $0x6] sm:$0x7] }
 0x30c   :  { %2899 = vmatpush1.bf16.msra.mxu0 %v4323_v30 }
 0x30d   :  { %2900 = vmatprep.subr.bf16.mxu0 %v4329_v32  ;;  %v4342_v32 = vld [vmem:[#allocation8 + $0x758] ss:$12 sps:$4 sm:$0xff]  }
 0x30e   :  { %3759 = vmatpush3.bf16.msra.mxu1 %v4254_v44  ;;  %v2326_v44 = vrot.slane %v2321_v43, %v4608_v63 }
 0x30f   :  { %3760 = vmatprep.subr.bf16.mxu1 %v4255_v45  ;;  %v2330_v45 = vrot.slane %v2321_v43, %v4612_v4 }
 0x310   :  { %2901 = vmatpush1.bf16.msra.mxu0 %v4327_v33  ;;  %v4343_v33 = vld [vmem:[#allocation8 + $0x800] ss:$12 sps:$4 sm:$0xff]  }
 0x311   :  { %2902 = vmatprep.subr.bf16.mxu0 %v4333_v34  ;;  %v4344_v34 = vld [vmem:[#allocation8 + $0x740] ss:$12 sps:$4 sm:$0xff]  }
 0x312   :  { %3761 = vmatpush3.bf16.msra.mxu1 %v4256_v46  ;;  %v2338_v46 = vpack.c.bf16 %v2326_v44, %v2326_v44  ;;  %v4354_v44 = vld [vmem:[#allocation8 + $0x6c8] ss:$12 sps:$4 sm:$0xff]  }
 0x313   :  { %3762 = vmatprep.subr.bf16.mxu1 %v4257_v47  ;;  %v2339_v47 = vpack.c.bf16 %v2330_v45, %v2330_v45  ;;  %v4355_v45 = vld [vmem:[%s4807_s5 + $0x78] sm:$0xff]  }
 0x314   :  { %2903 = vmatpush1.bf16.msra.mxu0 %v4331_v35  ;;  %v4345_v35 = vld [vmem:[#allocation8 + $0x7e8] ss:$12 sps:$4 sm:$0xff]  }
 0x315   :  { %2904 = vmatprep.subr.bf16.mxu0 %v4337_v36  ;;  %v4346_v36 = vld [vmem:[#allocation8 + $0x728] ss:$12 sps:$4 sm:$0xff]  }
 0x316   :  { %3763 = vmatpush3.bf16.msra.mxu1 %v4258_v48  ;;  %v2342_v48 = vpack.i.b16 %v2338_v46, %v2338_v46  ;;  %v4356_v46 = vld [vmem:[%s4807_s5 + $0x38] sm:$0xff]  }
 0x317   :  { %2849 = vmatprep.subr.bf16.mxu1 %v4261_v49  ;;  %v2349_v49 = vpack.i.b16 %v2339_v47, %v2339_v47  ;;  %v4357_v47 = vld [vmem:[%s4807_s5 + $0x70] sm:$0xff]  }
 0x318   :  { %2905 = vmatpush1.bf16.msra.mxu0 %v4335_v37  ;;  %v4347_v37 = vld [vmem:[#allocation8 + $0x7d0] ss:$12 sps:$4 sm:$0xff]  }
 0x319   :  { %2270 = vmatmul.mubr.bf16.vlgmr.msra.gmra.mxu1 %v4668_v13  ;;  %v4292_v13 = vld [vmem:[#allocation8 + $0x7e0] ss:$12 sps:$4 sm:$0xff]   ;;  %3779 = vmatprep.subr.bf16.mxu0 %v4339_v38  ;;  %v4348_v38 = vld [vmem:[#allocation8 + $0x710] ss:$12 sps:$4 sm:$0xff]  }
 0x31a   :  { %2850 = vmatpush1.bf16.msra.mxu1 %v4259_v50 }
 0x31b   :  { %2851 = vmatprep.subr.bf16.mxu1 %v4264_v51 }
 0x31e   :  { %2852 = vmatpush1.bf16.msra.mxu1 %v4262_v52 }
 0x31f   :  { %2853 = vmatprep.subr.bf16.mxu1 %v4267_v53  ;;  %v2347_v53 = vrot.slane %v2342_v48, %v4608_v63  ;;  %v4358_v48 = vld [vmem:[%s4807_s5 + $0x30] sm:$0xff]  }
 0x322   :  { %2854 = vmatpush1.bf16.msra.mxu1 %v4265_v54 }
 0x323   :  { %2855 = vmatprep.subr.bf16.mxu1 %v4270_v55 }
 0x326   :  { %2856 = vmatpush1.bf16.msra.mxu1 %v4268_v56 }
 0x327   :  { %2857 = vmatprep.subr.bf16.mxu1 %v4273_v57 }
 0x32a   :  { %2858 = vmatpush1.bf16.msra.mxu1 %v4271_v58  ;;  %v2354_v58 = vrot.slane %v2349_v49, %v4608_v63  ;;  %v4359_v49 = vld [vmem:[%s4807_s5 + $0x68] sm:$0xff]  }
 0x32b   :  { %2859 = vmatprep.subr.bf16.mxu1 %v4276_v59 }
 0x32e   :  { %2860 = vmatpush1.bf16.msra.mxu1 %v4274_v60 }
 0x32f   :  { %2861 = vmatprep.subr.bf16.mxu1 %v4279_v61 }
 0x332   :  { %2862 = vmatpush1.bf16.msra.mxu1 %v4277_v62 }
 0x333   :  { %2863 = vmatprep.subr.bf16.mxu1 %v4282_v3 }
 0x336   :  { %2864 = vmatpush1.bf16.msra.mxu1 %v4280_v5 }
 0x337   :  { %2865 = vmatprep.subr.bf16.mxu1 %v4285_v6 }
 0x33a   :  { %2866 = vmatpush2.bf16.msra.mxu1 %v4283_v7 }
 0x33b   :  { %2867 = vmatprep.subr.bf16.mxu1 %v4288_v8  ;;  %v4310_v8 = vld [vmem:[#allocation8 + $0x8f0] ss:$12 sps:$4 sm:$0xff]  }
 0x33e   :  { %2868 = vmatpush2.bf16.msra.mxu1 %v4286_v9 }
 0x33f   :  { %2869 = vmatprep.subr.bf16.mxu1 %v4291_v10  ;;  %v4314_v10 = vld [vmem:[#allocation8 + $0x8d8] ss:$12 sps:$4 sm:$0xff]  }
 0x342   :  { %2870 = vmatpush2.bf16.msra.mxu1 %v4289_v11  ;;  %v4318_v11 = vld [vmem:[#allocation8 + $0x8c0] ss:$12 sps:$4 sm:$0xff]  }
 0x343   :  { %2871 = vmatprep.subr.bf16.mxu1 %v4294_v12  ;;  %v4322_v12 = vld [vmem:[#allocation8 + $0x8a8] ss:$12 sps:$4 sm:$0xff]  }
 0x346   :  { %2872 = vmatpush2.bf16.msra.mxu1 %v4292_v13  ;;  %v4326_v13 = vld [vmem:[#allocation8 + $0x890] ss:$12 sps:$4 sm:$0xff]  }
 0x347   :  { %2873 = vmatprep.subr.bf16.mxu1 %v4297_v14  ;;  %v2334_v14 = vrot.slane %v2321_v43, %v4610_v2  ;;  %v4353_v43 = vld [vmem:[#allocation8 + $0x788] ss:$12 sps:$4 sm:$0xff]  }
 0x349   :  { %v2340_v15 = vpack.c.bf16 %v2334_v14, %v2334_v14  ;;  %v3015_v14 = vld [vmem:[#allocation10 + $0x9] sm:$0x7] }
 0x34a   :  { %2874 = vmatpush2.bf16.msra.mxu1 %v4295_v17 }
 0x34b   :  { %2875 = vmatprep.subr.bf16.mxu1 %v4300_v20  ;;  %v2356_v18 = vpack.i.b16 %v2340_v15, %v2340_v15  ;;  %v3020_v15 = vrot.slane %v3015_v14, %v4608_v63 }
 0x34e   :  { %2876 = vmatpush2.bf16.msra.mxu1 %v4298_v21 }
 0x34f   :  { %2877 = vmatprep.subr.bf16.mxu1 %v4303_v24  ;;  %v2361_v24 = vrot.slane %v2356_v18, %v4608_v63 }
 0x352   :  { %2878 = vmatpush2.bf16.msra.mxu1 %v4301_v25  ;;  %v4338_v25 = vld [vmem:[#allocation8 + $0x848] ss:$12 sps:$4 sm:$0xff]  }
 0x353   :  { %2879 = vmatprep.subr.bf16.mxu1 %v4306_v28 }
 0x356   :  { %2880 = vmatpush2.bf16.msra.mxu1 %v4304_v29  ;;  %v4340_v29 = vld [vmem:[#allocation8 + $0x770] ss:$12 sps:$4 sm:$0xff]  }
 0x357   :  { %3909 = vmatprep.subr.bf16.mxu1 %v4539_v0 }
 0x398   :  { %v2189_v39 = vpop.f32.mrf.mxu0 }
 0x39a   :  { %v2191_v40 = vpop.f32.mrf.mxu0 }
 0x39c   :  { %v2193_v41 = vpop.f32.mrf.mxu0 }
 0x39d   :  { %v4351_v41 = vld [vmem:[#allocation8 + $0x7a0] ss:$12 sps:$4 sm:$0xff]  }
 0x39e   :  { %v2194_v42 = vpop.f32.mrf.mxu0 }
 0x39f   :  { %v4352_v42 = vld [vmem:[#allocation8 + $0x6e0] ss:$12 sps:$4 sm:$0xff]  }
 0x3b9   :  { %v2230_v50 = vpop.f32.mrf.mxu1  ;;  %v2311_v51 = vpop.f32.mrf.mxu0 }
 0x3ba   :  { %v2231_v52 = vadd.f32 %v2230_v50, %v2189_v39  ;;  %v4349_v39 = vld [vmem:[#allocation8 + $0x7b8] ss:$12 sps:$4 sm:$0xff]   ;;  %v4360_v50 = vld [vmem:[%s4807_s5 + $0x28] sm:$0xff]  }
 0x3bb   :  { %v2232_v54 = vpop.f32.mrf.mxu1  ;;  %v3907_v55 = vpop.f32.mrf.mxu0 }
 0x3bc   :  { %v2317_v56 = vpack.c.bf16 %v2231_v52, %v2231_v52  ;;  %v2233_v57 = vadd.f32 %v2232_v54, %v2191_v40  ;;  %v4350_v40 = vld [vmem:[#allocation8 + $0x6f8] ss:$12 sps:$4 sm:$0xff]   ;;  %v4364_v54 = vld [vmem:[%s4807_s5 + $0x18] sm:$0xff]  }
 0x3bd   :  { %v2234_v59 = vpop.f32.mrf.mxu1  ;;  %v2314_v60 = vpop.f32.mrf.mxu0  ;;  %v4362_v52 = vld [vmem:[%s4807_s5 + $0x20] sm:$0xff]   ;;  %v4365_v55 = vld [vmem:[%s4807_s5 + $0x50] sm:$0xff]  }
 0x3be   :  { %v2318_v61 = vpack.c.bf16 %v2233_v57, %v2233_v57  ;;  %v2362_v62 = vadd.bf16 %v2347_v53, %v2317_v56  ;;  %v4363_v53 = vld [vmem:[%s4807_s5 + $0x58] sm:$0xff]   ;;  %v4366_v56 = vld [vmem:[%s4807_s5 + $0x10] sm:$0xff]   ;;  %v4367_v57 = vld [vmem:[%s4807_s5 + $0x48] sm:$0xff]  }
 0x3bf   :  { %v2235_v3 = vpop.f32.mrf.mxu1  ;;  %v3908_v5 = vpop.f32.mrf.mxu0  ;;  %v4369_v59 = vld [vmem:[%s4807_s5 + $0x40] sm:$0xff]  }
 0x3c0   :  { %v2363_v6 = vadd.bf16 %v2354_v58, %v2318_v61  ;;  %v4692_v9 = vmax.bf16 %v4540_v1, %v2362_v62  ;;  %v4368_v58 = vld [vmem:[%s4807_s5 + $0x8] sm:$0xff]   ;;  %v4370_v60 = vld [vmem:[%s4807_s5] sm:$0xff]   ;;  %v4371_v61 = vld [vmem:[%s4807_s5 + $0xb8] sm:$0xff]  }
 0x3c1   :  { %v4372_v62 = vld [vmem:[%s4807_s5 + $0xb0] sm:$0xff]   ;;  %v4373_v3 = vld [vmem:[%s4807_s5 + $0xa8] sm:$0xff]   ;;  %v4374_v5 = vld [vmem:[%s4807_s5 + $0xa0] sm:$0xff]  }
 0x3c2   :  { %v2366_v7 = vmax.bf16 %v4540_v1, %v2363_v6  ;;  %v4375_v6 = vld [vmem:[%s4807_s5 + $0x98] sm:$0xff]  }
 0x3c4   :  { %2881 = vmatprep.mubr.bf16.mxu1 %v2366_v7 }
 0x3c5   :  { %2882 = vmatmul.mubr.bf16.vlgmr.msra.gmra.mxu1 %v4692_v9 }
 0x3c6   :  { %3910 = vmatpush3.bf16.msra.mxu1 %v4310_v8  ;;  %3925 = vmatprep.mubr.msk.bf16.mxu1 %vm4541_vm0, %v4539_v0  ;;  %v4377_v8 = vld [vmem:[%s4807_s5 + $0x88] sm:$0xff]  }
 0x3c7   :  { %3911 = vmatprep.subr.bf16.mxu1 %v4539_v0 }
 0x3ca   :  { %3912 = vmatpush3.bf16.msra.mxu1 %v4314_v10 }
 0x3cb   :  { %3913 = vmatprep.subr.bf16.mxu1 %v4539_v0 }
 0x3ce   :  { %3914 = vmatpush3.bf16.msra.mxu1 %v4318_v11 }
 0x3cf   :  { %3915 = vmatprep.subr.bf16.mxu1 %v4539_v0 }
 0x3d2   :  { %3916 = vmatpush3.bf16.msra.mxu1 %v4322_v12 }
 0x3d3   :  { %3917 = vmatprep.subr.bf16.mxu1 %v4539_v0 }
 0x3d6   :  { %3918 = vmatpush3.bf16.msra.mxu1 %v4326_v13 }
 0x3d7   :  { %3919 = vmatprep.subr.bf16.mxu1 %v4539_v0 }
 0x3d9   :  { %v3764_v17 = vpop.f32.mrf.mxu1 }
 0x3da   :  { %3920 = vmatpush3.bf16.msra.mxu1 %v4330_v16  ;;  %v3024_v16 = vrot.slane %v3015_v14, %v4612_v4 }
 0x3db   :  { %v3765_v20 = vpop.f32.mrf.mxu1  ;;  %3921 = vmatprep.subr.bf16.mxu1 %v4539_v0 }
 0x3dc   :  { %v3766_v21 = vadd.f32 %v3765_v20, %v3764_v17  ;;  %v3032_v17 = vpack.c.bf16 %v3020_v15, %v3020_v15  ;;  %v3033_v18 = vpack.c.bf16 %v3024_v16, %v3024_v16 }
 0x3dd   :  { %v3767_v22 = vpop.f32.mrf.mxu1 }
 0x3de   :  { %v2312_v23 = vadd.f32 %v3766_v21, %v2311_v51  ;;  %3922 = vmatpush3.bf16.msra.mxu1 %v4334_v19  ;;  %v4361_v51 = vld [vmem:[%s4807_s5 + $0x60] sm:$0xff]   ;;  %v3036_v19 = vpack.i.b16 %v3032_v17, %v3032_v17  ;;  %v3043_v20 = vpack.i.b16 %v3033_v18, %v3033_v18 }
 0x3df   :  { %v3768_v26 = vpop.f32.mrf.mxu1  ;;  %3923 = vmatprep.subr.bf16.mxu1 %v4539_v0 }
 0x3e0   :  { %v2319_v27 = vpack.c.bf16 %v2312_v23, %v2312_v23  ;;  %v3041_v23 = vrot.slane %v3036_v19, %v4608_v63 }
 0x3e2   :  { %v2364_v28 = vadd.bf16 %v2361_v24, %v2319_v27  ;;  %3924 = vmatpush3.bf16.msra.mxu1 %v4338_v25 }
 0x3e3   :  { %3929 = vmatprep.subr.bf16.mxu1 %v4539_v0 }
 0x3e4   :  { %v2367_v30 = vmax.bf16 %v4540_v1, %v2364_v28  ;;  %v3048_v28 = vrot.slane %v3043_v20, %v4608_v63 }
 0x3e6   :  { %2923 = vmatmul.mubr.bf16.vlgmr.msra.gmra.mxu0 %v2367_v30  ;;  %3926 = vmatmul.mubr.bf16.vlgmr.msra.gmra.mxu1 %v2367_v30 }
 0x3e7   :  { %3780 = vmatpush3.bf16.msra.mxu0 %v4340_v29  ;;  %2963 = vmatprep.mubr.bf16.mxu0 %v2366_v7  ;;  %v4376_v7 = vld [vmem:[%s4807_s5 + $0x90] sm:$0xff]  }
 0x3e8   :  { %3781 = vmatprep.subr.bf16.mxu0 %v4341_v31  ;;  %3945 = vmatprep.mubr.msk.bf16.mxu1 %vm4541_vm0, %v4539_v0 }
 0x3e9   :  { %3930 = vmatpush3.bf16.msra.mxu1 %v4371_v61 }
 0x3ea   :  { %3931 = vmatprep.subr.bf16.mxu1 %v4539_v0 }
 0x3eb   :  { %3782 = vmatpush3.bf16.msra.mxu0 %v4342_v32 }
 0x3ec   :  { %3783 = vmatprep.subr.bf16.mxu0 %v4343_v33 }
 0x3ed   :  { %3932 = vmatpush3.bf16.msra.mxu1 %v4372_v62 }
 0x3ee   :  { %3933 = vmatprep.subr.bf16.mxu1 %v4539_v0 }
 0x3ef   :  { %3784 = vmatpush3.bf16.msra.mxu0 %v4344_v34 }
 0x3f0   :  { %3785 = vmatprep.subr.bf16.mxu0 %v4345_v35 }
 0x3f1   :  { %3934 = vmatpush3.bf16.msra.mxu1 %v4373_v3 }
 0x3f2   :  { %3935 = vmatprep.subr.bf16.mxu1 %v4539_v0 }
 0x3f3   :  { %3786 = vmatpush3.bf16.msra.mxu0 %v4346_v36 }
 0x3f4   :  { %3787 = vmatprep.subr.bf16.mxu0 %v4347_v37  ;;  %v3028_v37 = vrot.slane %v3015_v14, %v4610_v2 }
 0x3f5   :  { %3936 = vmatpush3.bf16.msra.mxu1 %v4374_v5 }
 0x3f6   :  { %3937 = vmatprep.subr.bf16.mxu1 %v4539_v0 }
 0x3f7   :  { %3788 = vmatpush3.bf16.msra.mxu0 %v4348_v38  ;;  %v3034_v38 = vpack.c.bf16 %v3028_v37, %v3028_v37 }
 0x3f8   :  { %3789 = vmatprep.subr.bf16.mxu0 %v4349_v39 }
 0x3f9   :  { %3938 = vmatpush3.bf16.msra.mxu1 %v4375_v6 }
 0x3fa   :  { %3939 = vmatprep.subr.bf16.mxu1 %v4539_v0 }
 0x3fb   :  { %3790 = vmatpush3.bf16.msra.mxu0 %v4350_v40  ;;  %v3050_v40 = vpack.i.b16 %v3034_v38, %v3034_v38 }
 0x3fc   :  { %3791 = vmatprep.subr.bf16.mxu0 %v4351_v41 }
 0x3fd   :  { %3940 = vmatpush3.bf16.msra.mxu1 %v4376_v7 }
 0x3fe   :  { %3941 = vmatprep.subr.bf16.mxu1 %v4539_v0 }
 0x3ff   :  { %3792 = vmatpush3.bf16.msra.mxu0 %v4352_v42 }
 0x400   :  { %3793 = vmatprep.subr.bf16.mxu0 %v4353_v43 }
 0x401   :  { %3942 = vmatpush3.bf16.msra.mxu1 %v4377_v8 }
 0x402   :  { %3943 = vmatprep.subr.bf16.mxu1 %v4539_v0 }
 0x403   :  { %3794 = vmatpush3.bf16.msra.mxu0 %v4354_v44 }
 0x404   :  { %3810 = vmatprep.subr.bf16.mxu0 %v4355_v45  ;;  %v3055_v45 = vrot.slane %v3050_v40, %v4608_v63 }
 0x406   :  { %2964 = vmatmul.mubr.bf16.vlgmr.msra.gmra.mxu0 %v4692_v9  ;;  %v4378_v9 = vld [vmem:[%s4807_s5 + $0x80] sm:$0xff]   ;;  %s4542_s5 = smov [#allocation13]  }
 0x407   :  { %3811 = vmatpush3.bf16.msra.mxu0 %v4356_v46  ;;  %3944 = vmatpush3.bf16.msra.mxu1 %v4378_v9  ;;  %s3349_s0 = sshll.u32 %s4542_s5, 4  ;;  %s3350_s0 = int_to_ptr.vmem [resolvable:$true] %s3349_s0 }
 0x408   :  { %3812 = vmatprep.subr.bf16.mxu0 %v4357_v47  ;;  %s4499_s25 = scalar_lea.vmem %s3350_s0, 128  ;;  %p4504_p3 = scmp.lt.s32.totalorder %s3350_s0, %s3350_s0 }
 0x409   :  { %p4500_p2 = scmp.ne.s32.totalorder %s3350_s0, %s4499_s25  ;;  %p4505_p4 = scmp.lt.s32.totalorder %s4499_s25, %s4499_s25 }
 0x40b   :  { %3813 = vmatpush3.bf16.msra.mxu0 %v4358_v48  ;;  %p4506_p5 = por %p4505_p4, %p4504_p3 }
 0x40c   :  { %3814 = vmatprep.subr.bf16.mxu0 %v4359_v49 }
 0x40d   :  { %p4507_p6 = pnand %p4506_p5, %p4500_p2 }
 0x40f   :  { %3815 = vmatpush3.bf16.msra.mxu0 %v4360_v50 }
 0x410   :  { %3816 = vmatprep.subr.bf16.mxu0 %v4361_v51 }
 0x413   :  { %3817 = vmatpush3.bf16.msra.mxu0 %v4362_v52 }
 0x414   :  { %3818 = vmatprep.subr.bf16.mxu0 %v4363_v53 }
 0x417   :  { %3819 = vmatpush3.bf16.msra.mxu0 %v4364_v54  ;;  %v3658_v54 = vld [vmem:[#allocation11] ss:$0 sm:$0xff] }
 0x418   :  { %3820 = vmatprep.subr.bf16.mxu0 %v4365_v55 }
 0x41b   :  { %3821 = vmatpush3.bf16.msra.mxu0 %v4366_v56 }
 0x41c   :  { %3822 = vmatprep.subr.bf16.mxu0 %v4367_v57 }
 0x41f   :  { %3823 = vmatpush3.bf16.msra.mxu0 %v4368_v58 }
 0x420   :  { %3824 = vmatprep.subr.bf16.mxu0 %v4369_v59 }
 0x423   :  { %3825 = vmatpush3.bf16.msra.mxu0 %v4370_v60 }
 0x485   :  { %v2883_v10 = vpop.f32.mrf.mxu1 }
 0x487   :  { %v2885_v11 = vpop.f32.mrf.mxu1 }
 0x489   :  { %v2887_v12 = vpop.f32.mrf.mxu1 }
 0x48b   :  { %v2888_v13 = vpop.f32.mrf.mxu1 }
 0x4a6   :  { %v2924_v21 = vpop.f32.mrf.mxu0  ;;  %v3005_v0 = vpop.f32.mrf.mxu1 }
 0x4a7   :  { %v2925_v22 = vadd.f32 %v2924_v21, %v2883_v10 }
 0x4a8   :  { %v2926_v24 = vpop.f32.mrf.mxu0  ;;  %v3927_v25 = vpop.f32.mrf.mxu1 }
 0x4a9   :  { %v3011_v26 = vpack.c.bf16 %v2925_v22, %v2925_v22  ;;  %v2927_v27 = vadd.f32 %v2926_v24, %v2885_v11 }
 0x4aa   :  { %v2928_v29 = vpop.f32.mrf.mxu0  ;;  %v3008_v30 = vpop.f32.mrf.mxu1 }
 0x4ab   :  { %v3012_v31 = vpack.c.bf16 %v2927_v27, %v2927_v27  ;;  %v3056_v32 = vadd.bf16 %v3041_v23, %v3011_v26 }
 0x4ac   :  { %v2929_v4 = vpop.f32.mrf.mxu0  ;;  %v3928_v33 = vpop.f32.mrf.mxu1 }
 0x4ad   :  { %v3057_v34 = vadd.bf16 %v3048_v28, %v3012_v31  ;;  %v3059_v36 = vmax.bf16 %v4540_v1, %v3056_v32 }
 0x4af   :  { %v3060_v35 = vmax.bf16 %v4540_v1, %v3057_v34 }
 0x4b1   :  { %3293 = vmatprep.mubr.bf16.mxu0 %v3060_v35 }
 0x4b2   :  { %3294 = vmatmul.mubr.bf16.vlgmr.msra.gmra.mxu0 %v3059_v36 }
 0x4c6   :  { %v3795_v39 = vpop.f32.mrf.mxu0 }
 0x4c8   :  { %v3796_v41 = vpop.f32.mrf.mxu0 }
 0x4c9   :  { %v3797_v42 = vadd.f32 %v3796_v41, %v3795_v39 }
 0x4ca   :  { %v3798_v43 = vpop.f32.mrf.mxu0 }
 0x4cb   :  { %v3006_v44 = vadd.f32 %v3797_v42, %v3005_v0 }
 0x4cc   :  { %v3799_v46 = vpop.f32.mrf.mxu0 }
 0x4cd   :  { %v3013_v47 = vpack.c.bf16 %v3006_v44, %v3006_v44 }
 0x4cf   :  { %v3058_v48 = vadd.bf16 %v3055_v45, %v3013_v47 }
 0x4d1   :  { %v3061_v49 = vmax.bf16 %v4540_v1, %v3058_v48 }
 0x4d3   :  { %3946 = vmatmul.mubr.bf16.vlgmr.msra.gmra.mxu1 %v3061_v49 }
 0x572   :  { %v3826_v50 = vpop.f32.mrf.mxu0 }
 0x574   :  { %v3827_v51 = vpop.f32.mrf.mxu0 }
 0x575   :  { %v3828_v2 = vadd.f32 %v3827_v51, %v3826_v50 }
 0x576   :  { %v3829_v52 = vpop.f32.mrf.mxu0 }
 0x577   :  { %v3296_v55 = vadd.f32 %v3828_v2, %v3658_v54 }
 0x578   :  { %v3830_v53 = vpop.f32.mrf.mxu0 }
 0x593   :  { %v3335_v56 = vpop.f32.mrf.mxu1 }
 0x594   :  { %v3336_v57 = vadd.f32 %v3335_v56, %v3296_v55 }
 0x595   :  { %v3947_v63 = vpop.f32.mrf.mxu1 }
 0x596   :  { %3342 = vst.msk [vmem:[#allocation13] sm:$0xff] %vm3341_vm3, %v3336_v57 }
 0x597   :  { %v3338_v58 = vpop.f32.mrf.mxu1 }
 0x598   :  { %4510 = shalt.err (!%p4507_p6)
}
 0x599   :  { %3352 = dma.vmem_to_hbm [thread:$0]  %s3350_s0, 128, %s4809_s7, [#allocation4]   ;;  %v3948_v1 = vpop.f32.mrf.mxu1 }
 0x59a   :  { %4527 = dma.done.wait [#allocation4], 128  }
 0x59b   :  { %4528 = vsyncadd [#allocation4], 4294967168 }
 0x59c   :  { %3356 = vsyncpa [#allocation3], 1 }
 0x59d   :  { %3357 = vsyncpa [#allocation6], 1 }
 0x59e   :  { %3358 = vsyncpa [#allocation9], 1 }
 0x59f   :  { %3359 = vsyncpa [#allocation12], 1 }
 0x5a0   :  { %3360 = vsyncpa [#allocation4], 1 }

</bundles_post_ra>
